<compile_context>
chip_gen: v6e
topology: v6e:2x2x1
jax: 0.10.0
libtpu: 0.0.40
codegen_flags: <defaults>
</compile_context>

<pallas_src>
import jax
import jax.numpy as jnp
from jax import lax
from jax.experimental import pallas as pl
from jax.experimental.pallas import tpu as pltpu


# ---------------------------------------------------------------------------
# Fused Pallas kernel: the whole LSTMTagger forward pass
# ---------------------------------------------------------------------------
def _fused_tagger_kernel(ids_ref,                       # VMEM (L, 1) int32 token ids
                         emb_ref,                       # VMEM (V, E) embedding table
                         wih0_ref, whh0_ref, b0_ref,    # layer 0: (E,8H) (2H,8H) (1,8H)
                         wih1_ref, whh1_ref, b1_ref,    # layer 1: (2H,8H) (2H,8H) (1,8H)
                         wtag_ref, btag_ref,            # head: (2H, T), (1, T)
                         out_ref):                      # (L, T) log-probs
    f32 = jnp.float32
    L = out_ref.shape[0]
    V = emb_ref.shape[0]
    H2 = whh0_ref.shape[0]          # 2H (combined fwd+bwd hidden)
    H = H2 // 2
    G = whh0_ref.shape[1]           # 8H (packed gates, both directions)

    # ---- embedding gather as ONE one-hot matmul (no serialized scalar loads)
    ids = ids_ref[...]                                                   # (L, 1)
    onehot = (lax.broadcasted_iota(jnp.int32, (L, V), 1) == ids).astype(f32)
    embeds = jnp.dot(onehot, emb_ref[...], preferred_element_type=f32)   # (L, E)

    # ---- hoisted prologue constants, shared by both layers
    # anti-identity: (revm @ x) reverses x along the time axis
    revm = (lax.broadcasted_iota(jnp.int32, (L, L), 0)
            + lax.broadcasted_iota(jnp.int32, (L, L), 1) == L - 1).astype(f32)
    # lane mask selecting the backward-direction columns of the packed layout
    zero_h = jnp.zeros((L, H), f32)
    one_h = jnp.ones((L, H), f32)
    bwd_mask = jnp.concatenate([zero_h, one_h] * 4, axis=1)              # (L, 8H)

    def bidir_layer(x, wih, whh_blk, b):
        """One bidirectional LSTM layer -> (L, 2H) = [fwd | bwd] per timestep."""
        # Hoisted input->gate matmul: whole sequence, BOTH directions at once.
        pre = jnp.dot(x, wih, preferred_element_type=f32) + b            # (L, 8H)
        # Time-align backward-direction gate columns: row t <- row L-1-t.
        pre_rev = jnp.dot(revm, pre, preferred_element_type=f32)
        pre = pre + bwd_mask * (pre_rev - pre)

        h_cat = jnp.zeros((1, H2), f32)      # [h_f | h_b]
        c_cat = jnp.zeros((1, H2), f32)      # [c_f | c_b]
        hf_rows = [None] * L
        hb_rows = [None] * L

        # Static unroll: one fused MXU call + 2H-lane cell update per step.
        for t in range(L):
            g = pre[t:t + 1, :] + jnp.dot(h_cat, whh_blk,
                                          preferred_element_type=f32)    # (1, 8H)
            s = jax.nn.sigmoid(g)            # full-width EUP launch
            q = jnp.tanh(g)                  # full-width EUP launch
            # packed gate layout: [i_f i_b | f_f f_b | g_f g_b | o_f o_b]
            i_cat = s[:, 0:H2]
            f_cat = s[:, H2:2 * H2]
            g_cat = q[:, 2 * H2:3 * H2]
            o_cat = s[:, 3 * H2:4 * H2]
            c_cat = f_cat * c_cat + i_cat * g_cat
            h_cat = o_cat * jnp.tanh(c_cat)
            hf_rows[t] = h_cat[:, 0:H]              # fwd state is for time t
            hb_rows[L - 1 - t] = h_cat[:, H:H2]     # bwd state is for time L-1-t

        fwd = jnp.concatenate(hf_rows, axis=0)                           # (L, H)
        bwd = jnp.concatenate(hb_rows, axis=0)                           # (L, H)
        return jnp.concatenate([fwd, bwd], axis=1)                       # (L, 2H)

    # ---- layer 0 (bidirectional) ----
    h0 = bidir_layer(embeds, wih0_ref[...], whh0_ref[...], b0_ref[...])
    # TODO(synk): nn.LSTM(dropout=0.5) only applies between layers in training
    # mode; eval-mode forward semantics (identity) are implemented here.
    # ---- layer 1 (bidirectional) ----
    h1 = bidir_layer(h0, wih1_ref[...], whh1_ref[...], b1_ref[...])

    # ---- head: tanh(hidden2tag) + numerically-stable log_softmax ----
    logits = jnp.tanh(jnp.dot(h1, wtag_ref[...], preferred_element_type=f32)
                      + btag_ref[...])                                   # (L, T)
    z = logits - jnp.max(logits, axis=-1, keepdims=True)
    out_ref[...] = z - jnp.log(jnp.sum(jnp.exp(z), axis=-1, keepdims=True))


# ---------------------------------------------------------------------------
# One-time parameter prep (done OUTSIDE the per-call path, cached pytree)
# ---------------------------------------------------------------------------
def prepare_params(params):
    """Fuse/transpose PyTorch-layout weights into the kernel's packed layout."""
    f32 = jnp.float32
    H = params["w_hh_l0"].shape[1]

    def pack_cols(a, b):
        # a, b: (..., 4H) in PyTorch gate order i,f,g,o -> (..., 8H) packed
        # column order: [i_f i_b | f_f f_b | g_f g_b | o_f o_b]
        chunks = []
        for k in range(4):
            chunks.append(a[..., k * H:(k + 1) * H])
            chunks.append(b[..., k * H:(k + 1) * H])
        return jnp.concatenate(chunks, axis=-1)

    def layer(sfx_f, sfx_b):
        wih_f = params[f"w_ih_{sfx_f}"].astype(f32).T                    # (D_in, 4H)
        wih_b = params[f"w_ih_{sfx_b}"].astype(f32).T
        wih = pack_cols(wih_f, wih_b)                                    # (D_in, 8H)

        whh_f = params[f"w_hh_{sfx_f}"].astype(f32).T                    # (H, 4H)
        whh_b = params[f"w_hh_{sfx_b}"].astype(f32).T
        z = jnp.zeros_like(whh_f)
        whh = jnp.concatenate([pack_cols(whh_f, z),                      # rows for h_f
                               pack_cols(z, whh_b)], axis=0)             # rows for h_b
        # -> block-diagonal (2H, 8H)

        b_f = (params[f"b_ih_{sfx_f}"] + params[f"b_hh_{sfx_f}"]).astype(f32).reshape(1, -1)
        b_b = (params[f"b_ih_{sfx_b}"] + params[f"b_hh_{sfx_b}"]).astype(f32).reshape(1, -1)
        b = pack_cols(b_f, b_b)                                          # (1, 8H)
        return wih, whh, b

    wih0, whh0, b0 = layer("l0", "l0r")
    wih1, whh1, b1 = layer("l1", "l1r")
    return {
        "emb": params["embedding"].astype(f32),                          # (V, E)
        "wih0": wih0, "whh0": whh0, "b0": b0,
        "wih1": wih1, "whh1": whh1, "b1": b1,
        "wtag": params["w_tag"].astype(f32).T,                           # (2H, T)
        "btag": params["b_tag"].astype(f32).reshape(1, -1),              # (1, T)
    }


# ---------------------------------------------------------------------------
# Wrapper: one pallas_call for the whole forward pass
# ---------------------------------------------------------------------------
def lstm_tagger_forward(sentence, prepped):
    """Full LSTMTagger forward. sentence: (L,) int32 token ids -> (L, T)."""
    f32 = jnp.float32
    L = sentence.shape[0]
    T = prepped["wtag"].shape[1]
    ids = sentence.astype(jnp.int32).reshape(L, 1)

    args = (ids, prepped["emb"],
            prepped["wih0"], prepped["whh0"], prepped["b0"],
            prepped["wih1"], prepped["whh1"], prepped["b1"],
            prepped["wtag"], prepped["btag"])

    return pl.pallas_call(
        _fused_tagger_kernel,
        out_shape=jax.ShapeDtypeStruct((L, T), f32),
        in_specs=[pl.BlockSpec(memory_space=pltpu.MemorySpace.VMEM)] * len(args),
        out_specs=pl.BlockSpec(memory_space=pltpu.MemorySpace.VMEM),
    )(*args)


# ---------------------------------------------------------------------------
# Pure-JAX reference (for correctness check)
# ---------------------------------------------------------------------------
def _reference_forward(sentence, params):
    embeds = params["embedding"][sentence]                               # (L, E)

    def run_dir(x, sfx, reverse):
        w_ih = params[f"w_ih_{sfx}"]
        w_hh = params[f"w_hh_{sfx}"]
        b = params[f"b_ih_{sfx}"] + params[f"b_hh_{sfx}"]
        H = w_hh.shape[1]
        xs = x[::-1] if reverse else x

        def step(carry, x_t):
            h, c = carry
            g = w_ih @ x_t + w_hh @ h + b
            i = jax.nn.sigmoid(g[0:H])
            f = jax.nn.sigmoid(g[H:2 * H])
            gg = jnp.tanh(g[2 * H:3 * H])
            o = jax.nn.sigmoid(g[3 * H:4 * H])
            c = f * c + i * gg
            h = o * jnp.tanh(c)
            return (h, c), h

        (_, _), hs = lax.scan(step, (jnp.zeros(H), jnp.zeros(H)), xs)
        return hs[::-1] if reverse else hs

    h0 = jnp.concatenate([run_dir(embeds, "l0", False),
                          run_dir(embeds, "l0r", True)], axis=-1)
    h1 = jnp.concatenate([run_dir(h0, "l1", False),
                          run_dir(h0, "l1r", True)], axis=-1)
    logits = jnp.tanh(h1 @ params["w_tag"].T + params["b_tag"])
    return jax.nn.log_softmax(logits, axis=-1)


# ---------------------------------------------------------------------------
# Deterministic parameter construction (shapes from LSTMTagger.__init__)
# ---------------------------------------------------------------------------
def init_params(key, embedding_dim, hidden_dim, vocab_size, tagset_size):
    E, H, V, T = embedding_dim, hidden_dim, vocab_size, tagset_size
    keys = jax.random.split(key, 32)
    kit = iter(keys)
    bound = 1.0 / jnp.sqrt(H)

    def u(k, shape):
        return jax.random.uniform(k, shape, jnp.float32, -bound, bound)

    params = {"embedding": jax.random.normal(next(kit), (V, E), jnp.float32)}

    # LSTM layers 0 and 1, forward + reverse directions.
    for suffix, d_in in (("l0", E), ("l0r", E), ("l1", 2 * H), ("l1r", 2 * H)):
        params[f"w_ih_{suffix}"] = u(next(kit), (4 * H, d_in))
        params[f"w_hh_{suffix}"] = u(next(kit), (4 * H, H))
        params[f"b_ih_{suffix}"] = u(next(kit), (4 * H,))
        params[f"b_hh_{suffix}"] = u(next(kit), (4 * H,))

    lin_bound = 1.0 / jnp.sqrt(2 * H)
    params["w_tag"] = jax.random.uniform(next(kit), (T, 2 * H), jnp.float32,
                                         -lin_bound, lin_bound)
    params["b_tag"] = jax.random.uniform(next(kit), (T,), jnp.float32,
                                         -lin_bound, lin_bound)
    return params


# ---------------------------------------------------------------------------
# Main
# ---------------------------------------------------------------------------
if __name__ == "__main__":
    EMBEDDING_DIM = 32
    HIDDEN_DIM = 32
    VOCAB_SIZE = 20
    TAGSET_SIZE = 8
    SEQ_LEN = 8

    key = jax.random.PRNGKey(0)
    pkey, skey = jax.random.split(key)
    params = init_params(pkey, EMBEDDING_DIM, HIDDEN_DIM, VOCAB_SIZE, TAGSET_SIZE)
    sentence = jax.random.randint(skey, (SEQ_LEN,), 0, VOCAB_SIZE, jnp.int32)

    # Weight fusion / transposition is done ONCE, outside the per-call path.
    prepped = jax.tree_util.tree_map(jax.block_until_ready, prepare_params(params))

    fwd = jax.jit(lstm_tagger_forward)
    tag_scores = jax.block_until_ready(fwd(sentence, prepped))

    assert tag_scores.shape == (SEQ_LEN, TAGSET_SIZE)
    assert bool(jnp.all(jnp.isfinite(tag_scores)))
    # log_softmax rows must sum to ~1 in prob space.
    assert bool(jnp.allclose(jnp.sum(jnp.exp(tag_scores), axis=1), 1.0, atol=1e-4))

    # Cross-check against a pure-JAX reference implementation.
    ref = jax.block_until_ready(jax.jit(_reference_forward)(sentence, params))
    assert bool(jnp.allclose(tag_scores, ref, atol=1e-4, rtol=1e-4))

    print("KERNEL_OK")
</pallas_src>

<mosaic_0001>
module attributes {stable_mosaic.version = 11 : i64} {
  func.func @_fused_tagger_kernel(%arg0: memref<8x1xi32, #tpu.memory_space<vmem>>, %arg1: memref<20x32xf32, #tpu.memory_space<vmem>>, %arg2: memref<32x256xf32, #tpu.memory_space<vmem>>, %arg3: memref<64x256xf32, #tpu.memory_space<vmem>>, %arg4: memref<1x256xf32, #tpu.memory_space<vmem>>, %arg5: memref<64x256xf32, #tpu.memory_space<vmem>>, %arg6: memref<64x256xf32, #tpu.memory_space<vmem>>, %arg7: memref<1x256xf32, #tpu.memory_space<vmem>>, %arg8: memref<64x8xf32, #tpu.memory_space<vmem>>, %arg9: memref<1x8xf32, #tpu.memory_space<vmem>>, %arg10: memref<8x8xf32, #tpu.memory_space<vmem>>) attributes {dimension_semantics = [], scalar_prefetch = 0 : i64, scratch_operands = 0 : i64, tpu.core_type = #tpu.core_type<tc>} {
    %c0 = arith.constant 0 : index
    %c0_0 = arith.constant 0 : index
    %0 = vector.load %arg0[%c0, %c0_0] : memref<8x1xi32, #tpu.memory_space<vmem>>, vector<8x1xi32>
    %1 = tpu.iota {dimensions = array<i32: 1>} : vector<8x20xi32>
    %2 = vector.broadcast %0 : vector<8x1xi32> to vector<8x20xi32>
    %3 = arith.cmpi eq, %1, %2 : vector<8x20xi32>
    %4 = arith.extui %3 : vector<8x20xi1> to vector<8x20xi32>
    %5 = arith.sitofp %4 : vector<8x20xi32> to vector<8x20xf32>
    %c0_1 = arith.constant 0 : index
    %c0_2 = arith.constant 0 : index
    %6 = vector.load %arg1[%c0_1, %c0_2] : memref<20x32xf32, #tpu.memory_space<vmem>>, vector<20x32xf32>
    %cst = arith.constant dense<0.000000e+00> : vector<8x32xf32>
    %7 = tpu.matmul %5, %6, %cst {dimension_numbers = #tpu.dot_dimension_numbers<[1], [0], [0], [1], [0, 0, 1, 1], [], []>} : vector<8x20xf32>, vector<20x32xf32>, vector<8x32xf32> -> vector<8x32xf32>
    %8 = tpu.iota {dimensions = array<i32: 0>} : vector<8x8xi32>
    %9 = tpu.iota {dimensions = array<i32: 1>} : vector<8x8xi32>
    %10 = arith.addi %8, %9 : vector<8x8xi32>
    %c7_i32 = arith.constant 7 : i32
    %11 = vector.broadcast %c7_i32 : i32 to vector<8x8xi32>
    %12 = arith.cmpi eq, %10, %11 : vector<8x8xi32>
    %13 = arith.extui %12 : vector<8x8xi1> to vector<8x8xi32>
    %14 = arith.sitofp %13 : vector<8x8xi32> to vector<8x8xf32>
    %cst_3 = arith.constant 0.000000e+00 : f32
    %15 = vector.broadcast %cst_3 : f32 to vector<8x32xf32>
    %cst_4 = arith.constant 1.000000e+00 : f32
    %16 = vector.broadcast %cst_4 : f32 to vector<8x32xf32>
    %17 = tpu.concatenate %15, %16, %15, %16, %15, %16, %15, %16 in 1 : vector<8x32xf32>, vector<8x32xf32>, vector<8x32xf32>, vector<8x32xf32>, vector<8x32xf32>, vector<8x32xf32>, vector<8x32xf32>, vector<8x32xf32> -> vector<8x256xf32>
    %c0_5 = arith.constant 0 : index
    %c0_6 = arith.constant 0 : index
    %18 = vector.load %arg2[%c0_5, %c0_6] : memref<32x256xf32, #tpu.memory_space<vmem>>, vector<32x256xf32>
    %c0_7 = arith.constant 0 : index
    %c0_8 = arith.constant 0 : index
    %19 = vector.load %arg3[%c0_7, %c0_8] : memref<64x256xf32, #tpu.memory_space<vmem>>, vector<64x256xf32>
    %c0_9 = arith.constant 0 : index
    %c0_10 = arith.constant 0 : index
    %20 = vector.load %arg4[%c0_9, %c0_10] : memref<1x256xf32, #tpu.memory_space<vmem>>, vector<1x256xf32>
    %cst_11 = arith.constant dense<0.000000e+00> : vector<8x256xf32>
    %21 = tpu.matmul %7, %18, %cst_11 {dimension_numbers = #tpu.dot_dimension_numbers<[1], [0], [0], [1], [0, 0, 1, 1], [], []>} : vector<8x32xf32>, vector<32x256xf32>, vector<8x256xf32> -> vector<8x256xf32>
    %22 = vector.broadcast %20 : vector<1x256xf32> to vector<8x256xf32>
    %23 = arith.addf %21, %22 : vector<8x256xf32>
    %cst_12 = arith.constant dense<0.000000e+00> : vector<8x256xf32>
    %24 = tpu.matmul %14, %23, %cst_12 {dimension_numbers = #tpu.dot_dimension_numbers<[1], [0], [0], [1], [0, 0, 1, 1], [], []>} : vector<8x8xf32>, vector<8x256xf32>, vector<8x256xf32> -> vector<8x256xf32>
    %25 = arith.subf %24, %23 : vector<8x256xf32>
    %26 = arith.mulf %17, %25 : vector<8x256xf32>
    %27 = arith.addf %23, %26 : vector<8x256xf32>
    %cst_13 = arith.constant 0.000000e+00 : f32
    %28 = vector.broadcast %cst_13 : f32 to vector<1x64xf32>
    %cst_14 = arith.constant 0.000000e+00 : f32
    %29 = vector.broadcast %cst_14 : f32 to vector<1x64xf32>
    %30 = vector.extract_strided_slice %27 {offsets = [0, 0], sizes = [1, 256], strides = [1, 1]} : vector<8x256xf32> to vector<1x256xf32>
    %cst_15 = arith.constant dense<0.000000e+00> : vector<1x256xf32>
    %31 = tpu.matmul %28, %19, %cst_15 {dimension_numbers = #tpu.dot_dimension_numbers<[1], [0], [0], [1], [0, 0, 1, 1], [], []>} : vector<1x64xf32>, vector<64x256xf32>, vector<1x256xf32> -> vector<1x256xf32>
    %32 = arith.addf %30, %31 : vector<1x256xf32>
    %33 = arith.negf %32 : vector<1x256xf32>
    %34 = math.exp %33 : vector<1x256xf32>
    %cst_16 = arith.constant 1.000000e+00 : f32
    %35 = vector.broadcast %cst_16 : f32 to vector<1x256xf32>
    %36 = arith.addf %35, %34 : vector<1x256xf32>
    %37 = arith.divf %35, %36 : vector<1x256xf32>
    %38 = math.tanh %32 : vector<1x256xf32>
    %39 = vector.extract_strided_slice %37 {offsets = [0, 0], sizes = [1, 64], strides = [1, 1]} : vector<1x256xf32> to vector<1x64xf32>
    %40 = vector.extract_strided_slice %37 {offsets = [0, 64], sizes = [1, 64], strides = [1, 1]} : vector<1x256xf32> to vector<1x64xf32>
    %41 = vector.extract_strided_slice %38 {offsets = [0, 128], sizes = [1, 64], strides = [1, 1]} : vector<1x256xf32> to vector<1x64xf32>
    %42 = vector.extract_strided_slice %37 {offsets = [0, 192], sizes = [1, 64], strides = [1, 1]} : vector<1x256xf32> to vector<1x64xf32>
    %43 = arith.mulf %40, %29 : vector<1x64xf32>
    %44 = arith.mulf %39, %41 : vector<1x64xf32>
    %45 = arith.addf %43, %44 : vector<1x64xf32>
    %46 = math.tanh %45 : vector<1x64xf32>
    %47 = arith.mulf %42, %46 : vector<1x64xf32>
    %48 = vector.extract_strided_slice %47 {offsets = [0, 0], sizes = [1, 32], strides = [1, 1]} : vector<1x64xf32> to vector<1x32xf32>
    %49 = vector.extract_strided_slice %47 {offsets = [0, 32], sizes = [1, 32], strides = [1, 1]} : vector<1x64xf32> to vector<1x32xf32>
    %50 = vector.extract_strided_slice %27 {offsets = [1, 0], sizes = [1, 256], strides = [1, 1]} : vector<8x256xf32> to vector<1x256xf32>
    %cst_17 = arith.constant dense<0.000000e+00> : vector<1x256xf32>
    %51 = tpu.matmul %47, %19, %cst_17 {dimension_numbers = #tpu.dot_dimension_numbers<[1], [0], [0], [1], [0, 0, 1, 1], [], []>} : vector<1x64xf32>, vector<64x256xf32>, vector<1x256xf32> -> vector<1x256xf32>
    %52 = arith.addf %50, %51 : vector<1x256xf32>
    %53 = arith.negf %52 : vector<1x256xf32>
    %54 = math.exp %53 : vector<1x256xf32>
    %cst_18 = arith.constant 1.000000e+00 : f32
    %55 = vector.broadcast %cst_18 : f32 to vector<1x256xf32>
    %56 = arith.addf %55, %54 : vector<1x256xf32>
    %57 = arith.divf %55, %56 : vector<1x256xf32>
    %58 = math.tanh %52 : vector<1x256xf32>
    %59 = vector.extract_strided_slice %57 {offsets = [0, 0], sizes = [1, 64], strides = [1, 1]} : vector<1x256xf32> to vector<1x64xf32>
    %60 = vector.extract_strided_slice %57 {offsets = [0, 64], sizes = [1, 64], strides = [1, 1]} : vector<1x256xf32> to vector<1x64xf32>
    %61 = vector.extract_strided_slice %58 {offsets = [0, 128], sizes = [1, 64], strides = [1, 1]} : vector<1x256xf32> to vector<1x64xf32>
    %62 = vector.extract_strided_slice %57 {offsets = [0, 192], sizes = [1, 64], strides = [1, 1]} : vector<1x256xf32> to vector<1x64xf32>
    %63 = arith.mulf %60, %45 : vector<1x64xf32>
    %64 = arith.mulf %59, %61 : vector<1x64xf32>
    %65 = arith.addf %63, %64 : vector<1x64xf32>
    %66 = math.tanh %65 : vector<1x64xf32>
    %67 = arith.mulf %62, %66 : vector<1x64xf32>
    %68 = vector.extract_strided_slice %67 {offsets = [0, 0], sizes = [1, 32], strides = [1, 1]} : vector<1x64xf32> to vector<1x32xf32>
    %69 = vector.extract_strided_slice %67 {offsets = [0, 32], sizes = [1, 32], strides = [1, 1]} : vector<1x64xf32> to vector<1x32xf32>
    %70 = vector.extract_strided_slice %27 {offsets = [2, 0], sizes = [1, 256], strides = [1, 1]} : vector<8x256xf32> to vector<1x256xf32>
    %cst_19 = arith.constant dense<0.000000e+00> : vector<1x256xf32>
    %71 = tpu.matmul %67, %19, %cst_19 {dimension_numbers = #tpu.dot_dimension_numbers<[1], [0], [0], [1], [0, 0, 1, 1], [], []>} : vector<1x64xf32>, vector<64x256xf32>, vector<1x256xf32> -> vector<1x256xf32>
    %72 = arith.addf %70, %71 : vector<1x256xf32>
    %73 = arith.negf %72 : vector<1x256xf32>
    %74 = math.exp %73 : vector<1x256xf32>
    %cst_20 = arith.constant 1.000000e+00 : f32
    %75 = vector.broadcast %cst_20 : f32 to vector<1x256xf32>
    %76 = arith.addf %75, %74 : vector<1x256xf32>
    %77 = arith.divf %75, %76 : vector<1x256xf32>
    %78 = math.tanh %72 : vector<1x256xf32>
    %79 = vector.extract_strided_slice %77 {offsets = [0, 0], sizes = [1, 64], strides = [1, 1]} : vector<1x256xf32> to vector<1x64xf32>
    %80 = vector.extract_strided_slice %77 {offsets = [0, 64], sizes = [1, 64], strides = [1, 1]} : vector<1x256xf32> to vector<1x64xf32>
    %81 = vector.extract_strided_slice %78 {offsets = [0, 128], sizes = [1, 64], strides = [1, 1]} : vector<1x256xf32> to vector<1x64xf32>
    %82 = vector.extract_strided_slice %77 {offsets = [0, 192], sizes = [1, 64], strides = [1, 1]} : vector<1x256xf32> to vector<1x64xf32>
    %83 = arith.mulf %80, %65 : vector<1x64xf32>
    %84 = arith.mulf %79, %81 : vector<1x64xf32>
    %85 = arith.addf %83, %84 : vector<1x64xf32>
    %86 = math.tanh %85 : vector<1x64xf32>
    %87 = arith.mulf %82, %86 : vector<1x64xf32>
    %88 = vector.extract_strided_slice %87 {offsets = [0, 0], sizes = [1, 32], strides = [1, 1]} : vector<1x64xf32> to vector<1x32xf32>
    %89 = vector.extract_strided_slice %87 {offsets = [0, 32], sizes = [1, 32], strides = [1, 1]} : vector<1x64xf32> to vector<1x32xf32>
    %90 = vector.extract_strided_slice %27 {offsets = [3, 0], sizes = [1, 256], strides = [1, 1]} : vector<8x256xf32> to vector<1x256xf32>
    %cst_21 = arith.constant dense<0.000000e+00> : vector<1x256xf32>
    %91 = tpu.matmul %87, %19, %cst_21 {dimension_numbers = #tpu.dot_dimension_numbers<[1], [0], [0], [1], [0, 0, 1, 1], [], []>} : vector<1x64xf32>, vector<64x256xf32>, vector<1x256xf32> -> vector<1x256xf32>
    %92 = arith.addf %90, %91 : vector<1x256xf32>
    %93 = arith.negf %92 : vector<1x256xf32>
    %94 = math.exp %93 : vector<1x256xf32>
    %cst_22 = arith.constant 1.000000e+00 : f32
    %95 = vector.broadcast %cst_22 : f32 to vector<1x256xf32>
    %96 = arith.addf %95, %94 : vector<1x256xf32>
    %97 = arith.divf %95, %96 : vector<1x256xf32>
    %98 = math.tanh %92 : vector<1x256xf32>
    %99 = vector.extract_strided_slice %97 {offsets = [0, 0], sizes = [1, 64], strides = [1, 1]} : vector<1x256xf32> to vector<1x64xf32>
    %100 = vector.extract_strided_slice %97 {offsets = [0, 64], sizes = [1, 64], strides = [1, 1]} : vector<1x256xf32> to vector<1x64xf32>
    %101 = vector.extract_strided_slice %98 {offsets = [0, 128], sizes = [1, 64], strides = [1, 1]} : vector<1x256xf32> to vector<1x64xf32>
    %102 = vector.extract_strided_slice %97 {offsets = [0, 192], sizes = [1, 64], strides = [1, 1]} : vector<1x256xf32> to vector<1x64xf32>
    %103 = arith.mulf %100, %85 : vector<1x64xf32>
    %104 = arith.mulf %99, %101 : vector<1x64xf32>
    %105 = arith.addf %103, %104 : vector<1x64xf32>
    %106 = math.tanh %105 : vector<1x64xf32>
    %107 = arith.mulf %102, %106 : vector<1x64xf32>
    %108 = vector.extract_strided_slice %107 {offsets = [0, 0], sizes = [1, 32], strides = [1, 1]} : vector<1x64xf32> to vector<1x32xf32>
    %109 = vector.extract_strided_slice %107 {offsets = [0, 32], sizes = [1, 32], strides = [1, 1]} : vector<1x64xf32> to vector<1x32xf32>
    %110 = vector.extract_strided_slice %27 {offsets = [4, 0], sizes = [1, 256], strides = [1, 1]} : vector<8x256xf32> to vector<1x256xf32>
    %cst_23 = arith.constant dense<0.000000e+00> : vector<1x256xf32>
    %111 = tpu.matmul %107, %19, %cst_23 {dimension_numbers = #tpu.dot_dimension_numbers<[1], [0], [0], [1], [0, 0, 1, 1], [], []>} : vector<1x64xf32>, vector<64x256xf32>, vector<1x256xf32> -> vector<1x256xf32>
    %112 = arith.addf %110, %111 : vector<1x256xf32>
    %113 = arith.negf %112 : vector<1x256xf32>
    %114 = math.exp %113 : vector<1x256xf32>
    %cst_24 = arith.constant 1.000000e+00 : f32
    %115 = vector.broadcast %cst_24 : f32 to vector<1x256xf32>
    %116 = arith.addf %115, %114 : vector<1x256xf32>
    %117 = arith.divf %115, %116 : vector<1x256xf32>
    %118 = math.tanh %112 : vector<1x256xf32>
    %119 = vector.extract_strided_slice %117 {offsets = [0, 0], sizes = [1, 64], strides = [1, 1]} : vector<1x256xf32> to vector<1x64xf32>
    %120 = vector.extract_strided_slice %117 {offsets = [0, 64], sizes = [1, 64], strides = [1, 1]} : vector<1x256xf32> to vector<1x64xf32>
    %121 = vector.extract_strided_slice %118 {offsets = [0, 128], sizes = [1, 64], strides = [1, 1]} : vector<1x256xf32> to vector<1x64xf32>
    %122 = vector.extract_strided_slice %117 {offsets = [0, 192], sizes = [1, 64], strides = [1, 1]} : vector<1x256xf32> to vector<1x64xf32>
    %123 = arith.mulf %120, %105 : vector<1x64xf32>
    %124 = arith.mulf %119, %121 : vector<1x64xf32>
    %125 = arith.addf %123, %124 : vector<1x64xf32>
    %126 = math.tanh %125 : vector<1x64xf32>
    %127 = arith.mulf %122, %126 : vector<1x64xf32>
    %128 = vector.extract_strided_slice %127 {offsets = [0, 0], sizes = [1, 32], strides = [1, 1]} : vector<1x64xf32> to vector<1x32xf32>
    %129 = vector.extract_strided_slice %127 {offsets = [0, 32], sizes = [1, 32], strides = [1, 1]} : vector<1x64xf32> to vector<1x32xf32>
    %130 = vector.extract_strided_slice %27 {offsets = [5, 0], sizes = [1, 256], strides = [1, 1]} : vector<8x256xf32> to vector<1x256xf32>
    %cst_25 = arith.constant dense<0.000000e+00> : vector<1x256xf32>
    %131 = tpu.matmul %127, %19, %cst_25 {dimension_numbers = #tpu.dot_dimension_numbers<[1], [0], [0], [1], [0, 0, 1, 1], [], []>} : vector<1x64xf32>, vector<64x256xf32>, vector<1x256xf32> -> vector<1x256xf32>
    %132 = arith.addf %130, %131 : vector<1x256xf32>
    %133 = arith.negf %132 : vector<1x256xf32>
    %134 = math.exp %133 : vector<1x256xf32>
    %cst_26 = arith.constant 1.000000e+00 : f32
    %135 = vector.broadcast %cst_26 : f32 to vector<1x256xf32>
    %136 = arith.addf %135, %134 : vector<1x256xf32>
    %137 = arith.divf %135, %136 : vector<1x256xf32>
    %138 = math.tanh %132 : vector<1x256xf32>
    %139 = vector.extract_strided_slice %137 {offsets = [0, 0], sizes = [1, 64], strides = [1, 1]} : vector<1x256xf32> to vector<1x64xf32>
    %140 = vector.extract_strided_slice %137 {offsets = [0, 64], sizes = [1, 64], strides = [1, 1]} : vector<1x256xf32> to vector<1x64xf32>
    %141 = vector.extract_strided_slice %138 {offsets = [0, 128], sizes = [1, 64], strides = [1, 1]} : vector<1x256xf32> to vector<1x64xf32>
    %142 = vector.extract_strided_slice %137 {offsets = [0, 192], sizes = [1, 64], strides = [1, 1]} : vector<1x256xf32> to vector<1x64xf32>
    %143 = arith.mulf %140, %125 : vector<1x64xf32>
    %144 = arith.mulf %139, %141 : vector<1x64xf32>
    %145 = arith.addf %143, %144 : vector<1x64xf32>
    %146 = math.tanh %145 : vector<1x64xf32>
    %147 = arith.mulf %142, %146 : vector<1x64xf32>
    %148 = vector.extract_strided_slice %147 {offsets = [0, 0], sizes = [1, 32], strides = [1, 1]} : vector<1x64xf32> to vector<1x32xf32>
    %149 = vector.extract_strided_slice %147 {offsets = [0, 32], sizes = [1, 32], strides = [1, 1]} : vector<1x64xf32> to vector<1x32xf32>
    %150 = vector.extract_strided_slice %27 {offsets = [6, 0], sizes = [1, 256], strides = [1, 1]} : vector<8x256xf32> to vector<1x256xf32>
    %cst_27 = arith.constant dense<0.000000e+00> : vector<1x256xf32>
    %151 = tpu.matmul %147, %19, %cst_27 {dimension_numbers = #tpu.dot_dimension_numbers<[1], [0], [0], [1], [0, 0, 1, 1], [], []>} : vector<1x64xf32>, vector<64x256xf32>, vector<1x256xf32> -> vector<1x256xf32>
    %152 = arith.addf %150, %151 : vector<1x256xf32>
    %153 = arith.negf %152 : vector<1x256xf32>
    %154 = math.exp %153 : vector<1x256xf32>
    %cst_28 = arith.constant 1.000000e+00 : f32
    %155 = vector.broadcast %cst_28 : f32 to vector<1x256xf32>
    %156 = arith.addf %155, %154 : vector<1x256xf32>
    %157 = arith.divf %155, %156 : vector<1x256xf32>
    %158 = math.tanh %152 : vector<1x256xf32>
    %159 = vector.extract_strided_slice %157 {offsets = [0, 0], sizes = [1, 64], strides = [1, 1]} : vector<1x256xf32> to vector<1x64xf32>
    %160 = vector.extract_strided_slice %157 {offsets = [0, 64], sizes = [1, 64], strides = [1, 1]} : vector<1x256xf32> to vector<1x64xf32>
    %161 = vector.extract_strided_slice %158 {offsets = [0, 128], sizes = [1, 64], strides = [1, 1]} : vector<1x256xf32> to vector<1x64xf32>
    %162 = vector.extract_strided_slice %157 {offsets = [0, 192], sizes = [1, 64], strides = [1, 1]} : vector<1x256xf32> to vector<1x64xf32>
    %163 = arith.mulf %160, %145 : vector<1x64xf32>
    %164 = arith.mulf %159, %161 : vector<1x64xf32>
    %165 = arith.addf %163, %164 : vector<1x64xf32>
    %166 = math.tanh %165 : vector<1x64xf32>
    %167 = arith.mulf %162, %166 : vector<1x64xf32>
    %168 = vector.extract_strided_slice %167 {offsets = [0, 0], sizes = [1, 32], strides = [1, 1]} : vector<1x64xf32> to vector<1x32xf32>
    %169 = vector.extract_strided_slice %167 {offsets = [0, 32], sizes = [1, 32], strides = [1, 1]} : vector<1x64xf32> to vector<1x32xf32>
    %170 = vector.extract_strided_slice %27 {offsets = [7, 0], sizes = [1, 256], strides = [1, 1]} : vector<8x256xf32> to vector<1x256xf32>
    %cst_29 = arith.constant dense<0.000000e+00> : vector<1x256xf32>
    %171 = tpu.matmul %167, %19, %cst_29 {dimension_numbers = #tpu.dot_dimension_numbers<[1], [0], [0], [1], [0, 0, 1, 1], [], []>} : vector<1x64xf32>, vector<64x256xf32>, vector<1x256xf32> -> vector<1x256xf32>
    %172 = arith.addf %170, %171 : vector<1x256xf32>
    %173 = arith.negf %172 : vector<1x256xf32>
    %174 = math.exp %173 : vector<1x256xf32>
    %cst_30 = arith.constant 1.000000e+00 : f32
    %175 = vector.broadcast %cst_30 : f32 to vector<1x256xf32>
    %176 = arith.addf %175, %174 : vector<1x256xf32>
    %177 = arith.divf %175, %176 : vector<1x256xf32>
    %178 = math.tanh %172 : vector<1x256xf32>
    %179 = vector.extract_strided_slice %177 {offsets = [0, 0], sizes = [1, 64], strides = [1, 1]} : vector<1x256xf32> to vector<1x64xf32>
    %180 = vector.extract_strided_slice %177 {offsets = [0, 64], sizes = [1, 64], strides = [1, 1]} : vector<1x256xf32> to vector<1x64xf32>
    %181 = vector.extract_strided_slice %178 {offsets = [0, 128], sizes = [1, 64], strides = [1, 1]} : vector<1x256xf32> to vector<1x64xf32>
    %182 = vector.extract_strided_slice %177 {offsets = [0, 192], sizes = [1, 64], strides = [1, 1]} : vector<1x256xf32> to vector<1x64xf32>
    %183 = arith.mulf %180, %165 : vector<1x64xf32>
    %184 = arith.mulf %179, %181 : vector<1x64xf32>
    %185 = arith.addf %183, %184 : vector<1x64xf32>
    %186 = math.tanh %185 : vector<1x64xf32>
    %187 = arith.mulf %182, %186 : vector<1x64xf32>
    %188 = vector.extract_strided_slice %187 {offsets = [0, 0], sizes = [1, 32], strides = [1, 1]} : vector<1x64xf32> to vector<1x32xf32>
    %189 = vector.extract_strided_slice %187 {offsets = [0, 32], sizes = [1, 32], strides = [1, 1]} : vector<1x64xf32> to vector<1x32xf32>
    %190 = tpu.concatenate %48, %68, %88, %108, %128, %148, %168, %188 in 0 : vector<1x32xf32>, vector<1x32xf32>, vector<1x32xf32>, vector<1x32xf32>, vector<1x32xf32>, vector<1x32xf32>, vector<1x32xf32>, vector<1x32xf32> -> vector<8x32xf32>
    %191 = tpu.concatenate %189, %169, %149, %129, %109, %89, %69, %49 in 0 : vector<1x32xf32>, vector<1x32xf32>, vector<1x32xf32>, vector<1x32xf32>, vector<1x32xf32>, vector<1x32xf32>, vector<1x32xf32>, vector<1x32xf32> -> vector<8x32xf32>
    %192 = tpu.concatenate %190, %191 in 1 : vector<8x32xf32>, vector<8x32xf32> -> vector<8x64xf32>
    %c0_31 = arith.constant 0 : index
    %c0_32 = arith.constant 0 : index
    %193 = vector.load %arg5[%c0_31, %c0_32] : memref<64x256xf32, #tpu.memory_space<vmem>>, vector<64x256xf32>
    %c0_33 = arith.constant 0 : index
    %c0_34 = arith.constant 0 : index
    %194 = vector.load %arg6[%c0_33, %c0_34] : memref<64x256xf32, #tpu.memory_space<vmem>>, vector<64x256xf32>
    %c0_35 = arith.constant 0 : index
    %c0_36 = arith.constant 0 : index
    %195 = vector.load %arg7[%c0_35, %c0_36] : memref<1x256xf32, #tpu.memory_space<vmem>>, vector<1x256xf32>
    %cst_37 = arith.constant dense<0.000000e+00> : vector<8x256xf32>
    %196 = tpu.matmul %192, %193, %cst_37 {dimension_numbers = #tpu.dot_dimension_numbers<[1], [0], [0], [1], [0, 0, 1, 1], [], []>} : vector<8x64xf32>, vector<64x256xf32>, vector<8x256xf32> -> vector<8x256xf32>
    %197 = vector.broadcast %195 : vector<1x256xf32> to vector<8x256xf32>
    %198 = arith.addf %196, %197 : vector<8x256xf32>
    %cst_38 = arith.constant dense<0.000000e+00> : vector<8x256xf32>
    %199 = tpu.matmul %14, %198, %cst_38 {dimension_numbers = #tpu.dot_dimension_numbers<[1], [0], [0], [1], [0, 0, 1, 1], [], []>} : vector<8x8xf32>, vector<8x256xf32>, vector<8x256xf32> -> vector<8x256xf32>
    %200 = arith.subf %199, %198 : vector<8x256xf32>
    %201 = arith.mulf %17, %200 : vector<8x256xf32>
    %202 = arith.addf %198, %201 : vector<8x256xf32>
    %cst_39 = arith.constant 0.000000e+00 : f32
    %203 = vector.broadcast %cst_39 : f32 to vector<1x64xf32>
    %cst_40 = arith.constant 0.000000e+00 : f32
    %204 = vector.broadcast %cst_40 : f32 to vector<1x64xf32>
    %205 = vector.extract_strided_slice %202 {offsets = [0, 0], sizes = [1, 256], strides = [1, 1]} : vector<8x256xf32> to vector<1x256xf32>
    %cst_41 = arith.constant dense<0.000000e+00> : vector<1x256xf32>
    %206 = tpu.matmul %203, %194, %cst_41 {dimension_numbers = #tpu.dot_dimension_numbers<[1], [0], [0], [1], [0, 0, 1, 1], [], []>} : vector<1x64xf32>, vector<64x256xf32>, vector<1x256xf32> -> vector<1x256xf32>
    %207 = arith.addf %205, %206 : vector<1x256xf32>
    %208 = arith.negf %207 : vector<1x256xf32>
    %209 = math.exp %208 : vector<1x256xf32>
    %cst_42 = arith.constant 1.000000e+00 : f32
    %210 = vector.broadcast %cst_42 : f32 to vector<1x256xf32>
    %211 = arith.addf %210, %209 : vector<1x256xf32>
    %212 = arith.divf %210, %211 : vector<1x256xf32>
    %213 = math.tanh %207 : vector<1x256xf32>
    %214 = vector.extract_strided_slice %212 {offsets = [0, 0], sizes = [1, 64], strides = [1, 1]} : vector<1x256xf32> to vector<1x64xf32>
    %215 = vector.extract_strided_slice %212 {offsets = [0, 64], sizes = [1, 64], strides = [1, 1]} : vector<1x256xf32> to vector<1x64xf32>
    %216 = vector.extract_strided_slice %213 {offsets = [0, 128], sizes = [1, 64], strides = [1, 1]} : vector<1x256xf32> to vector<1x64xf32>
    %217 = vector.extract_strided_slice %212 {offsets = [0, 192], sizes = [1, 64], strides = [1, 1]} : vector<1x256xf32> to vector<1x64xf32>
    %218 = arith.mulf %215, %204 : vector<1x64xf32>
    %219 = arith.mulf %214, %216 : vector<1x64xf32>
    %220 = arith.addf %218, %219 : vector<1x64xf32>
    %221 = math.tanh %220 : vector<1x64xf32>
    %222 = arith.mulf %217, %221 : vector<1x64xf32>
    %223 = vector.extract_strided_slice %222 {offsets = [0, 0], sizes = [1, 32], strides = [1, 1]} : vector<1x64xf32> to vector<1x32xf32>
    %224 = vector.extract_strided_slice %222 {offsets = [0, 32], sizes = [1, 32], strides = [1, 1]} : vector<1x64xf32> to vector<1x32xf32>
    %225 = vector.extract_strided_slice %202 {offsets = [1, 0], sizes = [1, 256], strides = [1, 1]} : vector<8x256xf32> to vector<1x256xf32>
    %cst_43 = arith.constant dense<0.000000e+00> : vector<1x256xf32>
    %226 = tpu.matmul %222, %194, %cst_43 {dimension_numbers = #tpu.dot_dimension_numbers<[1], [0], [0], [1], [0, 0, 1, 1], [], []>} : vector<1x64xf32>, vector<64x256xf32>, vector<1x256xf32> -> vector<1x256xf32>
    %227 = arith.addf %225, %226 : vector<1x256xf32>
    %228 = arith.negf %227 : vector<1x256xf32>
    %229 = math.exp %228 : vector<1x256xf32>
    %cst_44 = arith.constant 1.000000e+00 : f32
    %230 = vector.broadcast %cst_44 : f32 to vector<1x256xf32>
    %231 = arith.addf %230, %229 : vector<1x256xf32>
    %232 = arith.divf %230, %231 : vector<1x256xf32>
    %233 = math.tanh %227 : vector<1x256xf32>
    %234 = vector.extract_strided_slice %232 {offsets = [0, 0], sizes = [1, 64], strides = [1, 1]} : vector<1x256xf32> to vector<1x64xf32>
    %235 = vector.extract_strided_slice %232 {offsets = [0, 64], sizes = [1, 64], strides = [1, 1]} : vector<1x256xf32> to vector<1x64xf32>
    %236 = vector.extract_strided_slice %233 {offsets = [0, 128], sizes = [1, 64], strides = [1, 1]} : vector<1x256xf32> to vector<1x64xf32>
    %237 = vector.extract_strided_slice %232 {offsets = [0, 192], sizes = [1, 64], strides = [1, 1]} : vector<1x256xf32> to vector<1x64xf32>
    %238 = arith.mulf %235, %220 : vector<1x64xf32>
    %239 = arith.mulf %234, %236 : vector<1x64xf32>
    %240 = arith.addf %238, %239 : vector<1x64xf32>
    %241 = math.tanh %240 : vector<1x64xf32>
    %242 = arith.mulf %237, %241 : vector<1x64xf32>
    %243 = vector.extract_strided_slice %242 {offsets = [0, 0], sizes = [1, 32], strides = [1, 1]} : vector<1x64xf32> to vector<1x32xf32>
    %244 = vector.extract_strided_slice %242 {offsets = [0, 32], sizes = [1, 32], strides = [1, 1]} : vector<1x64xf32> to vector<1x32xf32>
    %245 = vector.extract_strided_slice %202 {offsets = [2, 0], sizes = [1, 256], strides = [1, 1]} : vector<8x256xf32> to vector<1x256xf32>
    %cst_45 = arith.constant dense<0.000000e+00> : vector<1x256xf32>
    %246 = tpu.matmul %242, %194, %cst_45 {dimension_numbers = #tpu.dot_dimension_numbers<[1], [0], [0], [1], [0, 0, 1, 1], [], []>} : vector<1x64xf32>, vector<64x256xf32>, vector<1x256xf32> -> vector<1x256xf32>
    %247 = arith.addf %245, %246 : vector<1x256xf32>
    %248 = arith.negf %247 : vector<1x256xf32>
    %249 = math.exp %248 : vector<1x256xf32>
    %cst_46 = arith.constant 1.000000e+00 : f32
    %250 = vector.broadcast %cst_46 : f32 to vector<1x256xf32>
    %251 = arith.addf %250, %249 : vector<1x256xf32>
    %252 = arith.divf %250, %251 : vector<1x256xf32>
    %253 = math.tanh %247 : vector<1x256xf32>
    %254 = vector.extract_strided_slice %252 {offsets = [0, 0], sizes = [1, 64], strides = [1, 1]} : vector<1x256xf32> to vector<1x64xf32>
    %255 = vector.extract_strided_slice %252 {offsets = [0, 64], sizes = [1, 64], strides = [1, 1]} : vector<1x256xf32> to vector<1x64xf32>
    %256 = vector.extract_strided_slice %253 {offsets = [0, 128], sizes = [1, 64], strides = [1, 1]} : vector<1x256xf32> to vector<1x64xf32>
    %257 = vector.extract_strided_slice %252 {offsets = [0, 192], sizes = [1, 64], strides = [1, 1]} : vector<1x256xf32> to vector<1x64xf32>
    %258 = arith.mulf %255, %240 : vector<1x64xf32>
    %259 = arith.mulf %254, %256 : vector<1x64xf32>
    %260 = arith.addf %258, %259 : vector<1x64xf32>
    %261 = math.tanh %260 : vector<1x64xf32>
    %262 = arith.mulf %257, %261 : vector<1x64xf32>
    %263 = vector.extract_strided_slice %262 {offsets = [0, 0], sizes = [1, 32], strides = [1, 1]} : vector<1x64xf32> to vector<1x32xf32>
    %264 = vector.extract_strided_slice %262 {offsets = [0, 32], sizes = [1, 32], strides = [1, 1]} : vector<1x64xf32> to vector<1x32xf32>
    %265 = vector.extract_strided_slice %202 {offsets = [3, 0], sizes = [1, 256], strides = [1, 1]} : vector<8x256xf32> to vector<1x256xf32>
    %cst_47 = arith.constant dense<0.000000e+00> : vector<1x256xf32>
    %266 = tpu.matmul %262, %194, %cst_47 {dimension_numbers = #tpu.dot_dimension_numbers<[1], [0], [0], [1], [0, 0, 1, 1], [], []>} : vector<1x64xf32>, vector<64x256xf32>, vector<1x256xf32> -> vector<1x256xf32>
    %267 = arith.addf %265, %266 : vector<1x256xf32>
    %268 = arith.negf %267 : vector<1x256xf32>
    %269 = math.exp %268 : vector<1x256xf32>
    %cst_48 = arith.constant 1.000000e+00 : f32
    %270 = vector.broadcast %cst_48 : f32 to vector<1x256xf32>
    %271 = arith.addf %270, %269 : vector<1x256xf32>
    %272 = arith.divf %270, %271 : vector<1x256xf32>
    %273 = math.tanh %267 : vector<1x256xf32>
    %274 = vector.extract_strided_slice %272 {offsets = [0, 0], sizes = [1, 64], strides = [1, 1]} : vector<1x256xf32> to vector<1x64xf32>
    %275 = vector.extract_strided_slice %272 {offsets = [0, 64], sizes = [1, 64], strides = [1, 1]} : vector<1x256xf32> to vector<1x64xf32>
    %276 = vector.extract_strided_slice %273 {offsets = [0, 128], sizes = [1, 64], strides = [1, 1]} : vector<1x256xf32> to vector<1x64xf32>
    %277 = vector.extract_strided_slice %272 {offsets = [0, 192], sizes = [1, 64], strides = [1, 1]} : vector<1x256xf32> to vector<1x64xf32>
    %278 = arith.mulf %275, %260 : vector<1x64xf32>
    %279 = arith.mulf %274, %276 : vector<1x64xf32>
    %280 = arith.addf %278, %279 : vector<1x64xf32>
    %281 = math.tanh %280 : vector<1x64xf32>
    %282 = arith.mulf %277, %281 : vector<1x64xf32>
    %283 = vector.extract_strided_slice %282 {offsets = [0, 0], sizes = [1, 32], strides = [1, 1]} : vector<1x64xf32> to vector<1x32xf32>
    %284 = vector.extract_strided_slice %282 {offsets = [0, 32], sizes = [1, 32], strides = [1, 1]} : vector<1x64xf32> to vector<1x32xf32>
    %285 = vector.extract_strided_slice %202 {offsets = [4, 0], sizes = [1, 256], strides = [1, 1]} : vector<8x256xf32> to vector<1x256xf32>
    %cst_49 = arith.constant dense<0.000000e+00> : vector<1x256xf32>
    %286 = tpu.matmul %282, %194, %cst_49 {dimension_numbers = #tpu.dot_dimension_numbers<[1], [0], [0], [1], [0, 0, 1, 1], [], []>} : vector<1x64xf32>, vector<64x256xf32>, vector<1x256xf32> -> vector<1x256xf32>
    %287 = arith.addf %285, %286 : vector<1x256xf32>
    %288 = arith.negf %287 : vector<1x256xf32>
    %289 = math.exp %288 : vector<1x256xf32>
    %cst_50 = arith.constant 1.000000e+00 : f32
    %290 = vector.broadcast %cst_50 : f32 to vector<1x256xf32>
    %291 = arith.addf %290, %289 : vector<1x256xf32>
    %292 = arith.divf %290, %291 : vector<1x256xf32>
    %293 = math.tanh %287 : vector<1x256xf32>
    %294 = vector.extract_strided_slice %292 {offsets = [0, 0], sizes = [1, 64], strides = [1, 1]} : vector<1x256xf32> to vector<1x64xf32>
    %295 = vector.extract_strided_slice %292 {offsets = [0, 64], sizes = [1, 64], strides = [1, 1]} : vector<1x256xf32> to vector<1x64xf32>
    %296 = vector.extract_strided_slice %293 {offsets = [0, 128], sizes = [1, 64], strides = [1, 1]} : vector<1x256xf32> to vector<1x64xf32>
    %297 = vector.extract_strided_slice %292 {offsets = [0, 192], sizes = [1, 64], strides = [1, 1]} : vector<1x256xf32> to vector<1x64xf32>
    %298 = arith.mulf %295, %280 : vector<1x64xf32>
    %299 = arith.mulf %294, %296 : vector<1x64xf32>
    %300 = arith.addf %298, %299 : vector<1x64xf32>
    %301 = math.tanh %300 : vector<1x64xf32>
    %302 = arith.mulf %297, %301 : vector<1x64xf32>
    %303 = vector.extract_strided_slice %302 {offsets = [0, 0], sizes = [1, 32], strides = [1, 1]} : vector<1x64xf32> to vector<1x32xf32>
    %304 = vector.extract_strided_slice %302 {offsets = [0, 32], sizes = [1, 32], strides = [1, 1]} : vector<1x64xf32> to vector<1x32xf32>
    %305 = vector.extract_strided_slice %202 {offsets = [5, 0], sizes = [1, 256], strides = [1, 1]} : vector<8x256xf32> to vector<1x256xf32>
    %cst_51 = arith.constant dense<0.000000e+00> : vector<1x256xf32>
    %306 = tpu.matmul %302, %194, %cst_51 {dimension_numbers = #tpu.dot_dimension_numbers<[1], [0], [0], [1], [0, 0, 1, 1], [], []>} : vector<1x64xf32>, vector<64x256xf32>, vector<1x256xf32> -> vector<1x256xf32>
    %307 = arith.addf %305, %306 : vector<1x256xf32>
    %308 = arith.negf %307 : vector<1x256xf32>
    %309 = math.exp %308 : vector<1x256xf32>
    %cst_52 = arith.constant 1.000000e+00 : f32
    %310 = vector.broadcast %cst_52 : f32 to vector<1x256xf32>
    %311 = arith.addf %310, %309 : vector<1x256xf32>
    %312 = arith.divf %310, %311 : vector<1x256xf32>
    %313 = math.tanh %307 : vector<1x256xf32>
    %314 = vector.extract_strided_slice %312 {offsets = [0, 0], sizes = [1, 64], strides = [1, 1]} : vector<1x256xf32> to vector<1x64xf32>
    %315 = vector.extract_strided_slice %312 {offsets = [0, 64], sizes = [1, 64], strides = [1, 1]} : vector<1x256xf32> to vector<1x64xf32>
    %316 = vector.extract_strided_slice %313 {offsets = [0, 128], sizes = [1, 64], strides = [1, 1]} : vector<1x256xf32> to vector<1x64xf32>
    %317 = vector.extract_strided_slice %312 {offsets = [0, 192], sizes = [1, 64], strides = [1, 1]} : vector<1x256xf32> to vector<1x64xf32>
    %318 = arith.mulf %315, %300 : vector<1x64xf32>
    %319 = arith.mulf %314, %316 : vector<1x64xf32>
    %320 = arith.addf %318, %319 : vector<1x64xf32>
    %321 = math.tanh %320 : vector<1x64xf32>
    %322 = arith.mulf %317, %321 : vector<1x64xf32>
    %323 = vector.extract_strided_slice %322 {offsets = [0, 0], sizes = [1, 32], strides = [1, 1]} : vector<1x64xf32> to vector<1x32xf32>
    %324 = vector.extract_strided_slice %322 {offsets = [0, 32], sizes = [1, 32], strides = [1, 1]} : vector<1x64xf32> to vector<1x32xf32>
    %325 = vector.extract_strided_slice %202 {offsets = [6, 0], sizes = [1, 256], strides = [1, 1]} : vector<8x256xf32> to vector<1x256xf32>
    %cst_53 = arith.constant dense<0.000000e+00> : vector<1x256xf32>
    %326 = tpu.matmul %322, %194, %cst_53 {dimension_numbers = #tpu.dot_dimension_numbers<[1], [0], [0], [1], [0, 0, 1, 1], [], []>} : vector<1x64xf32>, vector<64x256xf32>, vector<1x256xf32> -> vector<1x256xf32>
    %327 = arith.addf %325, %326 : vector<1x256xf32>
    %328 = arith.negf %327 : vector<1x256xf32>
    %329 = math.exp %328 : vector<1x256xf32>
    %cst_54 = arith.constant 1.000000e+00 : f32
    %330 = vector.broadcast %cst_54 : f32 to vector<1x256xf32>
    %331 = arith.addf %330, %329 : vector<1x256xf32>
    %332 = arith.divf %330, %331 : vector<1x256xf32>
    %333 = math.tanh %327 : vector<1x256xf32>
    %334 = vector.extract_strided_slice %332 {offsets = [0, 0], sizes = [1, 64], strides = [1, 1]} : vector<1x256xf32> to vector<1x64xf32>
    %335 = vector.extract_strided_slice %332 {offsets = [0, 64], sizes = [1, 64], strides = [1, 1]} : vector<1x256xf32> to vector<1x64xf32>
    %336 = vector.extract_strided_slice %333 {offsets = [0, 128], sizes = [1, 64], strides = [1, 1]} : vector<1x256xf32> to vector<1x64xf32>
    %337 = vector.extract_strided_slice %332 {offsets = [0, 192], sizes = [1, 64], strides = [1, 1]} : vector<1x256xf32> to vector<1x64xf32>
    %338 = arith.mulf %335, %320 : vector<1x64xf32>
    %339 = arith.mulf %334, %336 : vector<1x64xf32>
    %340 = arith.addf %338, %339 : vector<1x64xf32>
    %341 = math.tanh %340 : vector<1x64xf32>
    %342 = arith.mulf %337, %341 : vector<1x64xf32>
    %343 = vector.extract_strided_slice %342 {offsets = [0, 0], sizes = [1, 32], strides = [1, 1]} : vector<1x64xf32> to vector<1x32xf32>
    %344 = vector.extract_strided_slice %342 {offsets = [0, 32], sizes = [1, 32], strides = [1, 1]} : vector<1x64xf32> to vector<1x32xf32>
    %345 = vector.extract_strided_slice %202 {offsets = [7, 0], sizes = [1, 256], strides = [1, 1]} : vector<8x256xf32> to vector<1x256xf32>
    %cst_55 = arith.constant dense<0.000000e+00> : vector<1x256xf32>
    %346 = tpu.matmul %342, %194, %cst_55 {dimension_numbers = #tpu.dot_dimension_numbers<[1], [0], [0], [1], [0, 0, 1, 1], [], []>} : vector<1x64xf32>, vector<64x256xf32>, vector<1x256xf32> -> vector<1x256xf32>
    %347 = arith.addf %345, %346 : vector<1x256xf32>
    %348 = arith.negf %347 : vector<1x256xf32>
    %349 = math.exp %348 : vector<1x256xf32>
    %cst_56 = arith.constant 1.000000e+00 : f32
    %350 = vector.broadcast %cst_56 : f32 to vector<1x256xf32>
    %351 = arith.addf %350, %349 : vector<1x256xf32>
    %352 = arith.divf %350, %351 : vector<1x256xf32>
    %353 = math.tanh %347 : vector<1x256xf32>
    %354 = vector.extract_strided_slice %352 {offsets = [0, 0], sizes = [1, 64], strides = [1, 1]} : vector<1x256xf32> to vector<1x64xf32>
    %355 = vector.extract_strided_slice %352 {offsets = [0, 64], sizes = [1, 64], strides = [1, 1]} : vector<1x256xf32> to vector<1x64xf32>
    %356 = vector.extract_strided_slice %353 {offsets = [0, 128], sizes = [1, 64], strides = [1, 1]} : vector<1x256xf32> to vector<1x64xf32>
    %357 = vector.extract_strided_slice %352 {offsets = [0, 192], sizes = [1, 64], strides = [1, 1]} : vector<1x256xf32> to vector<1x64xf32>
    %358 = arith.mulf %355, %340 : vector<1x64xf32>
    %359 = arith.mulf %354, %356 : vector<1x64xf32>
    %360 = arith.addf %358, %359 : vector<1x64xf32>
    %361 = math.tanh %360 : vector<1x64xf32>
    %362 = arith.mulf %357, %361 : vector<1x64xf32>
    %363 = vector.extract_strided_slice %362 {offsets = [0, 0], sizes = [1, 32], strides = [1, 1]} : vector<1x64xf32> to vector<1x32xf32>
    %364 = vector.extract_strided_slice %362 {offsets = [0, 32], sizes = [1, 32], strides = [1, 1]} : vector<1x64xf32> to vector<1x32xf32>
    %365 = tpu.concatenate %223, %243, %263, %283, %303, %323, %343, %363 in 0 : vector<1x32xf32>, vector<1x32xf32>, vector<1x32xf32>, vector<1x32xf32>, vector<1x32xf32>, vector<1x32xf32>, vector<1x32xf32>, vector<1x32xf32> -> vector<8x32xf32>
    %366 = tpu.concatenate %364, %344, %324, %304, %284, %264, %244, %224 in 0 : vector<1x32xf32>, vector<1x32xf32>, vector<1x32xf32>, vector<1x32xf32>, vector<1x32xf32>, vector<1x32xf32>, vector<1x32xf32>, vector<1x32xf32> -> vector<8x32xf32>
    %367 = tpu.concatenate %365, %366 in 1 : vector<8x32xf32>, vector<8x32xf32> -> vector<8x64xf32>
    %c0_57 = arith.constant 0 : index
    %c0_58 = arith.constant 0 : index
    %368 = vector.load %arg8[%c0_57, %c0_58] : memref<64x8xf32, #tpu.memory_space<vmem>>, vector<64x8xf32>
    %cst_59 = arith.constant dense<0.000000e+00> : vector<8x8xf32>
    %369 = tpu.matmul %367, %368, %cst_59 {dimension_numbers = #tpu.dot_dimension_numbers<[1], [0], [0], [1], [0, 0, 1, 1], [], []>} : vector<8x64xf32>, vector<64x8xf32>, vector<8x8xf32> -> vector<8x8xf32>
    %c0_60 = arith.constant 0 : index
    %c0_61 = arith.constant 0 : index
    %370 = vector.load %arg9[%c0_60, %c0_61] : memref<1x8xf32, #tpu.memory_space<vmem>>, vector<1x8xf32>
    %371 = vector.broadcast %370 : vector<1x8xf32> to vector<8x8xf32>
    %372 = arith.addf %369, %371 : vector<8x8xf32>
    %373 = math.tanh %372 : vector<8x8xf32>
    %cst_62 = arith.constant dense<0xFF800000> : vector<8xf32>
    %374 = vector.multi_reduction <maximumf>, %373, %cst_62 [1] : vector<8x8xf32> to vector<8xf32>
    %375 = vector.shape_cast %374 : vector<8xf32> to vector<8x1xf32>
    %376 = vector.broadcast %375 : vector<8x1xf32> to vector<8x8xf32>
    %377 = arith.subf %373, %376 : vector<8x8xf32>
    %378 = math.exp %377 : vector<8x8xf32>
    %cst_63 = arith.constant dense<0.000000e+00> : vector<8xf32>
    %379 = vector.multi_reduction <add>, %378, %cst_63 [1] : vector<8x8xf32> to vector<8xf32>
    %380 = vector.shape_cast %379 : vector<8xf32> to vector<8x1xf32>
    %381 = math.log %380 : vector<8x1xf32>
    %382 = vector.broadcast %381 : vector<8x1xf32> to vector<8x8xf32>
    %383 = arith.subf %377, %382 : vector<8x8xf32>
    %c0_64 = arith.constant 0 : index
    %c0_65 = arith.constant 0 : index
    %384 = vector.load %arg10[%c0_64, %c0_65] : memref<8x8xf32, #tpu.memory_space<vmem>>, vector<8x8xf32>
    tpu.vector_store %arg10[%c0_64, %c0_65], %383 {strides = array<i32>} : memref<8x8xf32, #tpu.memory_space<vmem>>, vector<8x8xf32>,
    return
  }
}

</mosaic_0001>

<bundles_post_ra>
// kernel: lstm_tagger_forward.1
= control target key start
LH: loop header
LB: loop body
LE: loop exit
PB: predicated region body
PF: predicated region fallthrough
CT: control target
= control target key end

     0   :  { %15 = vsyncpa [#allocation3], 0  ;;  %s3694_s0 = inlined_call_operand.vmem [shape: s32[8,1], index: 0, kind: input, shape index: {}]   ;;  %s3695_s1 = inlined_call_operand.vmem [shape: f32[20,32], index: 1, kind: input, shape index: {}]   ;;  %s3696_s2 = inlined_call_operand.vmem [shape: f32[32,256], index: 2, kind: input, shape index: {}]   ;;  %s3697_s3 = inlined_call_operand.hbm [shape: f32[64,256], index: 3, kind: input, shape index: {}]   ;;  %s3698_s4 = inlined_call_operand.hbm [shape: f32[1,256], index: 4, kind: input, shape index: {}]   ;;  %s3699_s5 = inlined_call_operand.hbm [shape: f32[64,256], index: 5, kind: input, shape index: {}]   ;;  %s3700_s6 = inlined_call_operand.hbm [shape: f32[64,256], index: 6, kind: input, shape index: {}]   ;;  %s3701_s7 = inlined_call_operand.hbm [shape: f32[1,256], index: 7, kind: input, shape index: {}]   ;;  %s3702_s8 = inlined_call_operand.vmem [shape: f32[64,8], index: 8, kind: input, shape index: {}]   ;;  %s3703_s9 = inlined_call_operand.vmem [shape: f32[1,8], index: 9, kind: input, shape index: {}]   ;;  %s3704_s10 = inlined_call_operand.hbm [shape: f32[8,8], index: 10, kind: output, shape index: {}]  }
   0x1   :  { %16 = vsyncpa [#allocation6], 0 }
   0x2   :  { %17 = vsyncpa [#allocation9], 0 }
   0x3   :  { %18 = vsyncpa [#allocation4], 0  ;;  %s2961_s13 = smov [#allocation5]  }
   0x4   :  { %s43_s14 = sshll.u32 %s2961_s13, 4  ;;  %s44_s14 = int_to_ptr.vmem [resolvable:$true] %s43_s14 }
   0x5   :  { %s2841_s15 = scalar_lea.vmem %s44_s14, 32  ;;  %p2846_p1 = scmp.lt.s32.totalorder %s44_s14, %s44_s14 }
   0x6   :  { %p2842_p0 = scmp.ne.s32.totalorder %s44_s14, %s2841_s15  ;;  %p2847_p2 = scmp.lt.s32.totalorder %s2841_s15, %s2841_s15 }
   0x8   :  { %p2848_p3 = por %p2847_p2, %p2846_p1 }
   0xa   :  { %p2849_p4 = pnand %p2848_p3, %p2842_p0 }
   0xc   :  { %2852 = shalt.err (!%p2849_p4)
}
   0xd   :  { %46 = dma.hbm_to_vmem [thread:$0]  %s3698_s4, 32, %s44_s14, [#allocation6]  }
   0xe   :  { %s2962_s18 = smov [#allocation8]   ;;  %s2963_s20 = smov [#allocation2]  }
   0xf   :  { %s64_s19 = sshll.u32 %s2962_s18, 4  ;;  %s30_s21 = sshll.u32 %s2963_s20, 4  ;;  %s65_s19 = int_to_ptr.vmem [resolvable:$true] %s64_s19  ;;  %s31_s21 = int_to_ptr.vmem [resolvable:$true] %s30_s21 }
  0x10   :  { %s2861_s22 = scalar_lea.vmem %s65_s19, 2048  ;;  %p2866_p6 = scmp.lt.s32.totalorder %s65_s19, %s65_s19 }
  0x11   :  { %p2862_p5 = scmp.ne.s32.totalorder %s65_s19, %s2861_s22  ;;  %p2867_p7 = scmp.lt.s32.totalorder %s2861_s22, %s2861_s22 }
  0x13   :  { %p2868_p8 = por %p2867_p7, %p2866_p6 }
  0x15   :  { %p2869_p9 = pnand %p2868_p8, %p2862_p5 }
  0x17   :  { %2872 = shalt.err (!%p2869_p9)
}
  0x18   :  { %s2964_s23 = smov 256   ;;  %s2965_s24 = smov 16  }
  0x19   :  { %70 = dma.hbm_to_vmem [thread:$0]  %s3700_s6, 2048, %s65_s19, [#allocation9], %s2964_s23, %s2964_s23, %s2965_s24  }
  0x1a   :  { %s2881_s4 = scalar_lea.vmem %s31_s21, 2048  ;;  %p2886_p11 = scmp.lt.s32.totalorder %s31_s21, %s31_s21 }
  0x1b   :  { %p2882_p10 = scmp.ne.s32.totalorder %s31_s21, %s2881_s4  ;;  %p2887_p12 = scmp.lt.s32.totalorder %s2881_s4, %s2881_s4 }
  0x1d   :  { %p2888_p13 = por %p2887_p12, %p2886_p11 }
  0x1f   :  { %p2889_p0 = pnand %p2888_p13, %p2882_p10 }
  0x21   :  { %2892 = shalt.err (!%p2889_p0)
}
  0x22   :  { %36 = dma.hbm_to_vmem [thread:$0]  %s3697_s3, 2048, %s31_s21, [#allocation3], %s2964_s23, %s2964_s23, %s2965_s24  }
  0x23   :  { %s2966_s29 = smov [#allocation7]   ;;  %s2967_s11 = smov [#allocation10]  }
  0x24   :  { %s52_s30 = sshll.u32 %s2966_s29, 4  ;;  %s77_s12 = sshll.u32 %s2967_s11, 4  ;;  %s53_s30 = int_to_ptr.vmem [resolvable:$true] %s52_s30  ;;  %s78_s12 = int_to_ptr.vmem [resolvable:$true] %s77_s12 }
  0x25   :  { %s2901_s13 = scalar_lea.vmem %s53_s30, 2048  ;;  %p2906_p2 = scmp.lt.s32.totalorder %s53_s30, %s53_s30 }
  0x26   :  { %p2902_p1 = scmp.ne.s32.totalorder %s53_s30, %s2901_s13  ;;  %p2907_p3 = scmp.lt.s32.totalorder %s2901_s13, %s2901_s13 }
  0x28   :  { %p2908_p4 = por %p2907_p3, %p2906_p2 }
  0x2a   :  { %p2909_p5 = pnand %p2908_p4, %p2902_p1 }
  0x2c   :  { %2912 = shalt.err (!%p2909_p5)
}
  0x2d   :  { %58 = dma.hbm_to_vmem [thread:$0]  %s3699_s5, 2048, %s53_s30, [#allocation6], %s2964_s23, %s2964_s23, %s2965_s24  }
  0x2e   :  { %s2921_s15 = scalar_lea.vmem %s78_s12, 32  ;;  %p2926_p7 = scmp.lt.s32.totalorder %s78_s12, %s78_s12 }
  0x2f   :  { %p2922_p6 = scmp.ne.s32.totalorder %s78_s12, %s2921_s15  ;;  %p2927_p8 = scmp.lt.s32.totalorder %s2921_s15, %s2921_s15 }
  0x31   :  { %p2928_p9 = por %p2927_p8, %p2926_p7 }
  0x33   :  { %p2929_p10 = pnand %p2928_p9, %p2922_p6 }
  0x35   :  { %2932 = shalt.err (!%p2929_p10)
}
  0x36   :  { %80 = dma.hbm_to_vmem [thread:$0]  %s3701_s7, 32, %s78_s12, [#allocation9]  }
  0x37   :  { %2953 = dma.done.wait [#allocation3], 2048  }
  0x38   :  { %2954 = vsyncadd [#allocation3], 4294965248 }
  0x39   :  { %2955 = dma.done.wait [#allocation6], 2080  }
  0x3a   :  { %2956 = vsyncadd [#allocation6], 4294965216 }
  0x3b   :  { %2957 = dma.done.wait [#allocation9], 2080  }
  0x3c   :  { %2958 = vsyncadd [#allocation9], 4294965216  ;;  %v2968_v0 = vmov 0   ;;  %v2969_v1 = vmov 0.0   ;;  %vm116_vm0 = vcmask 1043456   ;;  %vm2970_vm1 = vmmov 0  }
  0x3d   :  { %2634 = vset.pattern.permute.xlu0 %v2968_v0  ;;  %2593 = vmatprep.subr.mxu0 %v2969_v1  ;;  %v100_v2 = vld [vmem:[%s3694_s0] sm:$0xff]  ;;  %v111_v3 = vld [vmem:[%s3695_s1 + $0x10] sm:$0xf]  ;;  %v110_v4 = vld [vmem:[%s3695_s1 + $0x8] sm:$0xff]  ;;  %v101_v13 = vlaneseq  ;;  %vm112_vm2 = vcmask 162816   ;;  %vm196_vm4 = vcmask 261120  }
  0x3e   :  { %305 = vmatprep.mubr.f32.mxu1 %v2969_v1  ;;  %2599 = vmatprep.mubr.msk.f32.mxu0 %vm2970_vm1, %v2969_v1  ;;  %v209_v5 = vld [vmem:[%s3696_s2 + $0x38] sm:$0xff]  ;;  %v208_v6 = vld [vmem:[%s3696_s2 + $0x30] sm:$0xff]  ;;  %v109_v7 = vld [vmem:[%s3695_s1] sm:$0xff]  ;;  %vm312_vm6 = vcmask 64512   ;;  %v2971_v48 = vmov 1.0   ;;  %vm198_vm7 = vcmask 523264  }
  0x3f   :  { %104 = vperm.xlu0 %2634, %v100_v2   ;;  %2594 = vmatpush3.msk.msra.mxu0 %vm116_vm0, %v111_v3  ;;  %v207_v8 = vld [vmem:[%s3696_s2 + $0x28] sm:$0xff]  ;;  %v206_v9 = vld [vmem:[%s3696_s2 + $0x20] sm:$0xff]  ;;  %v205_v10 = vld [vmem:[%s3696_s2 + $0x18] sm:$0xff]  ;;  %v102_v14 = vand.u32 127, %v101_v13  ;;  %v3140_v36 = vshrl.u32 %v101_v13, 7  ;;  %v197_v49 = vsel %vm196_vm4, 0.0, %v2971_v48 }
  0x40   :  { %2595 = vmatprep.subr.mxu0 %v2969_v1  ;;  %265 = vmatprep.subr.mxu1 %v209_v5  ;;  %v204_v11 = vld [vmem:[%s3696_s2 + $0x10] sm:$0xff]  ;;  %v203_v12 = vld [vmem:[%s3696_s2 + $0x8] sm:$0xff]  ;;  %v202_v17 = vld [vmem:[%s3696_s2] sm:$0xff]  ;;  %v199_v51 = vsel %vm198_vm7, %v197_v49, 0.0  ;;  %vm200_vm8 = vcmask 785408   ;;  %s2972_s2 = smov 64  }
  0x41   :  { %2596 = vmatpush3.msra.mxu0 %v110_v4  ;;  %266 = vmatpush1.msra.mxu1 %v208_v6  ;;  %v3091_v20 = vld [vmem:[#allocation2 + $0x78] sm:$0xff]  ;;  %v3093_v21 = vld [vmem:[#allocation2 + $0x70] sm:$0xff]  ;;  %v3096_v22 = vld [vmem:[#allocation2 + $0x68] sm:$0xff]  ;;  %v234_v37 = vsub.s32 1, %v3140_v36  ;;  %v230_v38 = vsub.s32 0, %v3140_v36  ;;  %v192_v39 = vadd.s32 %v3140_v36, %v102_v14  ;;  %v3192_v53 = vsel %vm200_vm8, %v199_v51, 1.0 }
  0x42   :  { %2597 = vmatprep.subr.mxu0 %v2969_v1  ;;  %267 = vmatprep.subr.mxu1 %v207_v8  ;;  %v3099_v23 = vld [vmem:[#allocation2 + $0x60] sm:$0xff]  ;;  %v3102_v24 = vld [vmem:[#allocation2 + $0x58] sm:$0xff]  ;;  %v3105_v25 = vld [vmem:[#allocation2 + $0x50] sm:$0xff]  ;;  %vm1260_vm9 = vcmask 1040384   ;;  %vm1262_vm10 = vcmask 1041408   ;;  %vm1264_vm11 = vcmask 1042432  }
  0x43   :  { %2598 = vmatpush3.msra.mxu0 %v109_v7  ;;  %268 = vmatpush1.msra.mxu1 %v206_v9  ;;  %v3108_v26 = vld [vmem:[#allocation2 + $0x48] sm:$0xff]  ;;  %v3111_v27 = vld [vmem:[#allocation2 + $0x40] sm:$0xff]  ;;  %v3114_v28 = vld [vmem:[#allocation2 + $0x38] sm:$0xff]  ;;  %vm193_vm5 = vcmp.eq.s32.totalorder %v192_v39, 7  ;;  %vm1267_vm12 = vcmask 1044480   ;;  %vm1269_vm13 = vcmask 1045504  }
  0x44   :  { %269 = vmatprep.subr.mxu1 %v205_v10  ;;  %512 = vmatprep.subr.mxu0 %v3091_v20  ;;  %v3117_v29 = vld [vmem:[#allocation2 + $0x30] sm:$0xff]  ;;  %v3120_v30 = vld [vmem:[#allocation2 + $0x28] sm:$0xff]  ;;  %v3123_v31 = vld [vmem:[#allocation2 + $0x20] sm:$0xff]  ;;  %v3150_v47 = vsel %vm193_vm5, 1.0, %v2969_v1  ;;  %vm1271_vm14 = vcmask 1046528  }
  0x45   :  { %270 = vmatpush1.msra.mxu1 %v204_v11  ;;  %v3126_v32 = vld [vmem:[#allocation2 + $0x18] sm:$0xff]  ;;  %v3129_v33 = vld [vmem:[#allocation2 + $0x10] sm:$0xff]  ;;  %v3132_v34 = vld [vmem:[#allocation2 + $0x8] sm:$0xff] }
  0x46   :  { %271 = vmatprep.subr.mxu1 %v203_v12  ;;  %v3135_v35 = vld [vmem:[#allocation2] sm:$0xff] }
  0x47   :  { %272 = vmatpush1.msra.mxu1 %v202_v17  ;;  %v226_v40 = vld [vmem:[#allocation5] sm:$0x3] }
  0x48   :  { %v235_v41 = vrot.slane %v226_v40, %v234_v37  ;;  %v231_v42 = vrot.slane %v226_v40, %v230_v38 }
  0xba   :  { %v105_v15 = vpop.permute.xlu0 %104 }
  0xbb   :  { %vm106_vm3 = vcmp.eq.s32.totalorder %v102_v14, %v105_v15 }
  0xbc   :  { %v2524_v16 = vsel %vm106_vm3, 1.0, %v2969_v1 }
  0xbd   :  { %2600 = vmatmul.mubr.msk.f32.vlgmr.msra.gmra.mxu0 %vm112_vm2, %v2524_v16 }
  0xbe   :  { %560 = vmatprep.mubr.f32.mxu0 %v2969_v1  ;;  %513 = vmatpush1.msra.mxu0 %v3093_v21 }
  0xbf   :  { %514 = vmatprep.subr.mxu0 %v3096_v22 }
  0xc0   :  { %515 = vmatpush1.msra.mxu0 %v3099_v23 }
  0xc1   :  { %516 = vmatprep.subr.mxu0 %v3102_v24 }
  0xc2   :  { %517 = vmatpush1.msra.mxu0 %v3105_v25 }
  0xc3   :  { %518 = vmatprep.subr.mxu0 %v3108_v26 }
  0xc4   :  { %519 = vmatpush1.msra.mxu0 %v3111_v27 }
  0xc5   :  { %520 = vmatprep.subr.mxu0 %v3114_v28 }
  0xc6   :  { %521 = vmatpush1.msra.mxu0 %v3117_v29 }
  0xc7   :  { %522 = vmatprep.subr.mxu0 %v3120_v30 }
  0xc8   :  { %523 = vmatpush1.msra.mxu0 %v3123_v31 }
  0xc9   :  { %524 = vmatprep.subr.mxu0 %v3126_v32 }
  0xca   :  { %525 = vmatpush1.msra.mxu0 %v3129_v33 }
  0xcb   :  { %526 = vmatprep.subr.mxu0 %v3132_v34 }
  0xcc   :  { %527 = vmatpush1.msra.mxu0 %v3135_v35 }
  0xcd   :  { %732 = vmatprep.subr.mxu0 %v3091_v20 }
 0x17d   :  { %v186_v18 = vpop.f32.mrf.mxu0 }
 0x17e   :  { %2528 = vmatmul.mubr.msk.f32.vlgmr.msra.gmra.mxu1 %vm196_vm4, %v186_v18 }
 0x17f   :  { %v2601_v19 = vpop.f32.mrf.mxu0  ;;  %380 = vmatprep.mubr.f32.mxu1 %v2969_v1 }
 0x23e   :  { %v307_v43 = vpop.f32.mrf.mxu1 }
 0x23f   :  { %v308_v46 = vadd.f32 %v307_v43, %v231_v42 }
 0x240   :  { %v309_v44 = vpop.f32.mrf.mxu1 }
 0x241   :  { %v310_v45 = vadd.f32 %v309_v44, %v235_v41 }
 0x243   :  { %346 = vmatprep.subr.mxu1 %v310_v45 }
 0x244   :  { %347 = vmatpush1.msra.mxu1 %v308_v46 }
 0x245   :  { %2529 = vmatmul.mubr.msk.f32.vlgmr.msra.gmra.mxu1 %vm312_vm6, %v3150_v47  ;;  %412 = vmatprep.subr.mxu1 %v3091_v20 }
 0x246   :  { %413 = vmatpush1.msra.mxu1 %v3093_v21  ;;  %460 = vmatprep.mubr.f32.mxu1 %v2969_v1 }
 0x247   :  { %414 = vmatprep.subr.mxu1 %v3096_v22 }
 0x248   :  { %415 = vmatpush1.msra.mxu1 %v3099_v23 }
 0x249   :  { %416 = vmatprep.subr.mxu1 %v3102_v24 }
 0x24a   :  { %417 = vmatpush1.msra.mxu1 %v3105_v25 }
 0x24b   :  { %418 = vmatprep.subr.mxu1 %v3108_v26 }
 0x24c   :  { %419 = vmatpush1.msra.mxu1 %v3111_v27 }
 0x24d   :  { %420 = vmatprep.subr.mxu1 %v3114_v28 }
 0x24e   :  { %421 = vmatpush1.msra.mxu1 %v3117_v29 }
 0x24f   :  { %422 = vmatprep.subr.mxu1 %v3120_v30 }
 0x250   :  { %423 = vmatpush1.msra.mxu1 %v3123_v31 }
 0x251   :  { %424 = vmatprep.subr.mxu1 %v3126_v32 }
 0x252   :  { %425 = vmatpush1.msra.mxu1 %v3129_v33 }
 0x253   :  { %426 = vmatprep.subr.mxu1 %v3132_v34 }
 0x254   :  { %427 = vmatpush1.msra.mxu1 %v3135_v35 }
 0x255   :  { %461 = vmatmul.mubr.f32.vlgmr.msra.gmra.mxu1 %v2969_v1  ;;  %622 = vmatprep.subr.mxu1 %v3091_v20 }
 0x256   :  { %623 = vmatpush1.msra.mxu1 %v3093_v21  ;;  %670 = vmatprep.mubr.f32.mxu1 %v2969_v1 }
 0x257   :  { %624 = vmatprep.subr.mxu1 %v3096_v22 }
 0x258   :  { %625 = vmatpush1.msra.mxu1 %v3099_v23 }
 0x259   :  { %626 = vmatprep.subr.mxu1 %v3102_v24 }
 0x25a   :  { %627 = vmatpush1.msra.mxu1 %v3105_v25 }
 0x25b   :  { %628 = vmatprep.subr.mxu1 %v3108_v26 }
 0x25c   :  { %629 = vmatpush1.msra.mxu1 %v3111_v27 }
 0x25d   :  { %630 = vmatprep.subr.mxu1 %v3114_v28 }
 0x25e   :  { %631 = vmatpush1.msra.mxu1 %v3117_v29 }
 0x25f   :  { %632 = vmatprep.subr.mxu1 %v3120_v30 }
 0x260   :  { %633 = vmatpush1.msra.mxu1 %v3123_v31 }
 0x261   :  { %634 = vmatprep.subr.mxu1 %v3126_v32 }
 0x262   :  { %635 = vmatpush1.msra.mxu1 %v3129_v33 }
 0x263   :  { %636 = vmatprep.subr.mxu1 %v3132_v34 }
 0x264   :  { %637 = vmatpush1.msra.mxu1 %v3135_v35 }
 0x265   :  { %842 = vmatprep.subr.mxu1 %v3091_v20 }
 0x305   :  { %v382_v50 = vpop.f32.mrf.mxu1 }
 0x306   :  { %v387_v52 = vsub.f32 %v382_v50, %v308_v46 }
 0x307   :  { %v384_v55 = vpop.f32.mrf.mxu1 }
 0x308   :  { %v389_v54 = vmul.f32 %v387_v52, %v3192_v53  ;;  %v388_v60 = vsub.f32 %v384_v55, %v310_v45 }
 0x30a   :  { %v3195_v56 = vadd.f32 %v389_v54, %v308_v46  ;;  %v390_v61 = vmul.f32 %v388_v60, %v3192_v53 }
 0x30c   :  { %v3199_v63 = vadd.f32 %v390_v61, %v310_v45 }
 0x315   :  { %v462_v57 = vpop.f32.mrf.mxu1 }
 0x316   :  { %v467_v58 = vadd.f32 %v462_v57, %v3195_v56 }
 0x317   :  { %v464_v62 = vpop.f32.mrf.mxu1 }
 0x318   :  { %v2530_v59 = vmul.f32 -1.442695, %v467_v58  ;;  %v468_v0 = vadd.f32 %v464_v62, %v3199_v63 }
 0x31a   :  { %2635 = vpow2.f32 %v2530_v59  ;;  %v2531_v7 = vmul.f32 -1.442695, %v468_v0 }
 0x31b   :  { %2637 = vtanh.f32 %v468_v0 }
 0x327   :  { %v2636_v2 = vpop.eup %2635 }
 0x328   :  { %v475_v3 = vadd.f32 1.0, %v2636_v2  ;;  %v2638_v4 = vpop.eup %2637 }
 0x32a   :  { %2639 = vrcp.f32 %v475_v3 }
 0x32b   :  { %2641 = vpow2.f32 %v2531_v7 }
 0x337   :  { %v2640_v5 = vpop.eup %2639 }
 0x338   :  { %v483_v6 = vmul.f32 %v2640_v5, %v2638_v4  ;;  %v2642_v8 = vpop.eup %2641  ;;  %v482_v10 = vmul.f32 0.0, %v2640_v5 }
 0x339   :  { %v476_v9 = vadd.f32 1.0, %v2642_v8 }
 0x33a   :  { %485 = vrot.lane.b32.xlu0 %v483_v6, %s2972_s2 }
 0x33b   :  { %2643 = vrcp.f32 %v476_v9 }
 0x348   :  { %v2644_v13 = vpop.eup %2643 }
 0x3ac   :  { %v486_v11 = vpop.permute.xlu0 %485 }
 0x3ad   :  { %v488_v12 = vadd.f32 %v486_v11, %v482_v10 }
 0x3af   :  { %2645 = vtanh.f32 %v488_v12  ;;  %v589_v46 = vrot.slane %v488_v12, 7 }
 0x3bc   :  { %v2646_v14 = vpop.eup %2645 }
 0x3bd   :  { %v3203_v15 = vmul.f32 %v2646_v14, %v2644_v13 }
 0x3bf   :  { %492 = vrot.lane.b32.xlu1 %v3203_v15, %s2972_s2 }
 0x431   :  { %v493_v16 = vpop.permute.xlu1 %492 }
 0x432   :  { %2532 = vmatmul.mubr.msk.f32.vlgmr.msra.gmra.mxu0 %vm198_vm7, %v493_v16 }
 0x433   :  { %733 = vmatpush1.msra.mxu0 %v3093_v21  ;;  %780 = vmatprep.mubr.f32.mxu0 %v2969_v1 }
 0x434   :  { %734 = vmatprep.subr.mxu0 %v3096_v22 }
 0x435   :  { %735 = vmatpush1.msra.mxu0 %v3099_v23 }
 0x436   :  { %736 = vmatprep.subr.mxu0 %v3102_v24 }
 0x437   :  { %737 = vmatpush1.msra.mxu0 %v3105_v25 }
 0x438   :  { %738 = vmatprep.subr.mxu0 %v3108_v26 }
 0x439   :  { %739 = vmatpush1.msra.mxu0 %v3111_v27 }
 0x43a   :  { %740 = vmatprep.subr.mxu0 %v3114_v28 }
 0x43b   :  { %741 = vmatpush1.msra.mxu0 %v3117_v29 }
 0x43c   :  { %742 = vmatprep.subr.mxu0 %v3120_v30 }
 0x43d   :  { %743 = vmatpush1.msra.mxu0 %v3123_v31 }
 0x43e   :  { %744 = vmatprep.subr.mxu0 %v3126_v32 }
 0x43f   :  { %745 = vmatpush1.msra.mxu0 %v3129_v33 }
 0x440   :  { %746 = vmatprep.subr.mxu0 %v3132_v34 }
 0x441   :  { %747 = vmatpush1.msra.mxu0 %v3135_v35 }
 0x442   :  { %952 = vmatprep.subr.mxu0 %v3091_v20 }
 0x4f2   :  { %v562_v17 = vpop.f32.mrf.mxu0 }
 0x4f3   :  { %v569_v18 = vrot.slane %v562_v17, 7 }
 0x4f4   :  { %v564_v40 = vpop.f32.mrf.mxu0 }
 0x4f5   :  { %v573_v19 = vadd.f32 %v569_v18, %v3195_v56  ;;  %v570_v41 = vrot.slane %v564_v40, 7 }
 0x4f7   :  { %v2533_v39 = vmul.f32 -1.442695, %v573_v19  ;;  %v574_v42 = vadd.f32 %v570_v41, %v3199_v63 }
 0x4f9   :  { %2647 = vpow2.f32 %v2533_v39  ;;  %v2534_v51 = vmul.f32 -1.442695, %v574_v42 }
 0x4fa   :  { %2649 = vtanh.f32 %v574_v42 }
 0x506   :  { %v2648_v43 = vpop.eup %2647 }
 0x507   :  { %v581_v44 = vadd.f32 1.0, %v2648_v43  ;;  %v2650_v45 = vpop.eup %2649 }
 0x509   :  { %2651 = vrcp.f32 %v581_v44 }
 0x50a   :  { %2653 = vpow2.f32 %v2534_v51 }
 0x516   :  { %v2652_v48 = vpop.eup %2651 }
 0x517   :  { %v592_v49 = vmul.f32 %v2652_v48, %v2650_v45  ;;  %v591_v50 = vmul.f32 %v2652_v48, %v589_v46  ;;  %v2654_v52 = vpop.eup %2653 }
 0x518   :  { %v582_v54 = vadd.f32 1.0, %v2654_v52 }
 0x519   :  { %594 = vrot.lane.b32.xlu1 %v592_v49, %s2972_s2 }
 0x51a   :  { %2655 = vrcp.f32 %v582_v54 }
 0x527   :  { %v2656_v58 = vpop.eup %2655 }
 0x58b   :  { %v595_v55 = vpop.permute.xlu1 %594 }
 0x58c   :  { %v597_v57 = vadd.f32 %v595_v55, %v591_v50 }
 0x58e   :  { %2657 = vtanh.f32 %v597_v57  ;;  %v699_v11 = vrot.slane %v597_v57, 7 }
 0x59b   :  { %v2658_v59 = vpop.eup %2657 }
 0x59c   :  { %v3228_v60 = vmul.f32 %v2658_v59, %v2656_v58 }
 0x59e   :  { %v601_v61 = vrot.slane %v3228_v60, 1  ;;  %v1261_v43 = vsel %vm1260_vm9, %v3203_v15, %v3228_v60 }
 0x5a0   :  { %602 = vrot.lane.b32.xlu0 %v601_v61, %s2972_s2 }
 0x612   :  { %v603_v62 = vpop.permute.xlu0 %602 }
 0x613   :  { %2535 = vmatmul.mubr.msk.f32.vlgmr.msra.gmra.mxu1 %vm198_vm7, %v603_v62 }
 0x614   :  { %843 = vmatpush1.msra.mxu1 %v3093_v21  ;;  %890 = vmatprep.mubr.f32.mxu1 %v2969_v1 }
 0x615   :  { %844 = vmatprep.subr.mxu1 %v3096_v22 }
 0x616   :  { %845 = vmatpush1.msra.mxu1 %v3099_v23 }
 0x617   :  { %846 = vmatprep.subr.mxu1 %v3102_v24 }
 0x618   :  { %847 = vmatpush1.msra.mxu1 %v3105_v25 }
 0x619   :  { %848 = vmatprep.subr.mxu1 %v3108_v26 }
 0x61a   :  { %849 = vmatpush1.msra.mxu1 %v3111_v27 }
 0x61b   :  { %850 = vmatprep.subr.mxu1 %v3114_v28 }
 0x61c   :  { %851 = vmatpush1.msra.mxu1 %v3117_v29 }
 0x61d   :  { %852 = vmatprep.subr.mxu1 %v3120_v30 }
 0x61e   :  { %853 = vmatpush1.msra.mxu1 %v3123_v31 }
 0x61f   :  { %854 = vmatprep.subr.mxu1 %v3126_v32 }
 0x620   :  { %855 = vmatpush1.msra.mxu1 %v3129_v33 }
 0x621   :  { %856 = vmatprep.subr.mxu1 %v3132_v34 }
 0x622   :  { %857 = vmatpush1.msra.mxu1 %v3135_v35 }
 0x623   :  { %1062 = vmatprep.subr.mxu1 %v3091_v20 }
 0x6d3   :  { %v672_v0 = vpop.f32.mrf.mxu1 }
 0x6d4   :  { %v679_v2 = vrot.slane %v672_v0, 6 }
 0x6d5   :  { %v674_v5 = vpop.f32.mrf.mxu1 }
 0x6d6   :  { %v683_v3 = vadd.f32 %v679_v2, %v3195_v56  ;;  %v680_v6 = vrot.slane %v674_v5, 6 }
 0x6d8   :  { %v2536_v4 = vmul.f32 -1.442695, %v683_v3  ;;  %v684_v7 = vadd.f32 %v680_v6, %v3199_v63 }
 0x6da   :  { %2659 = vpow2.f32 %v2536_v4  ;;  %v2537_v16 = vmul.f32 -1.442695, %v684_v7 }
 0x6db   :  { %2661 = vtanh.f32 %v684_v7 }
 0x6e7   :  { %v2660_v8 = vpop.eup %2659 }
 0x6e8   :  { %v691_v9 = vadd.f32 1.0, %v2660_v8  ;;  %v2662_v10 = vpop.eup %2661 }
 0x6ea   :  { %2663 = vrcp.f32 %v691_v9 }
 0x6eb   :  { %2665 = vpow2.f32 %v2537_v16 }
 0x6f7   :  { %v2664_v12 = vpop.eup %2663 }
 0x6f8   :  { %v702_v13 = vmul.f32 %v2664_v12, %v2662_v10  ;;  %v701_v14 = vmul.f32 %v2664_v12, %v699_v11  ;;  %v2666_v17 = vpop.eup %2665 }
 0x6f9   :  { %v692_v18 = vadd.f32 1.0, %v2666_v17 }
 0x6fa   :  { %704 = vrot.lane.b32.xlu1 %v702_v13, %s2972_s2 }
 0x6fb   :  { %2667 = vrcp.f32 %v692_v18 }
 0x708   :  { %v2668_v40 = vpop.eup %2667 }
 0x76c   :  { %v705_v19 = vpop.permute.xlu1 %704 }
 0x76d   :  { %v707_v39 = vadd.f32 %v705_v19, %v701_v14 }
 0x76f   :  { %2669 = vtanh.f32 %v707_v39  ;;  %v809_v61 = vrot.slane %v707_v39, 7 }
 0x77c   :  { %v2670_v41 = vpop.eup %2669 }
 0x77d   :  { %v3253_v42 = vmul.f32 %v2670_v41, %v2668_v40 }
 0x77f   :  { %v711_v44 = vrot.slane %v3253_v42, 2  ;;  %v1263_v45 = vsel %vm1262_vm10, %v1261_v43, %v3253_v42 }
 0x781   :  { %712 = vrot.lane.b32.xlu0 %v711_v44, %s2972_s2 }
 0x7f3   :  { %v713_v46 = vpop.permute.xlu0 %712 }
 0x7f4   :  { %2538 = vmatmul.mubr.msk.f32.vlgmr.msra.gmra.mxu0 %vm198_vm7, %v713_v46 }
 0x7f5   :  { %953 = vmatpush1.msra.mxu0 %v3093_v21  ;;  %1000 = vmatprep.mubr.f32.mxu0 %v2969_v1 }
 0x7f6   :  { %954 = vmatprep.subr.mxu0 %v3096_v22 }
 0x7f7   :  { %955 = vmatpush1.msra.mxu0 %v3099_v23 }
 0x7f8   :  { %956 = vmatprep.subr.mxu0 %v3102_v24 }
 0x7f9   :  { %957 = vmatpush1.msra.mxu0 %v3105_v25 }
 0x7fa   :  { %958 = vmatprep.subr.mxu0 %v3108_v26 }
 0x7fb   :  { %959 = vmatpush1.msra.mxu0 %v3111_v27 }
 0x7fc   :  { %960 = vmatprep.subr.mxu0 %v3114_v28 }
 0x7fd   :  { %961 = vmatpush1.msra.mxu0 %v3117_v29 }
 0x7fe   :  { %962 = vmatprep.subr.mxu0 %v3120_v30 }
 0x7ff   :  { %963 = vmatpush1.msra.mxu0 %v3123_v31 }
 0x800   :  { %964 = vmatprep.subr.mxu0 %v3126_v32 }
 0x801   :  { %965 = vmatpush1.msra.mxu0 %v3129_v33 }
 0x802   :  { %966 = vmatprep.subr.mxu0 %v3132_v34 }
 0x803   :  { %967 = vmatpush1.msra.mxu0 %v3135_v35 }
 0x804   :  { %1172 = vmatprep.subr.mxu0 %v3091_v20 }
 0x8b4   :  { %v782_v48 = vpop.f32.mrf.mxu0 }
 0x8b5   :  { %v789_v49 = vrot.slane %v782_v48, 5 }
 0x8b6   :  { %v784_v52 = vpop.f32.mrf.mxu0 }
 0x8b7   :  { %v793_v50 = vadd.f32 %v789_v49, %v3195_v56  ;;  %v790_v54 = vrot.slane %v784_v52, 5 }
 0x8b9   :  { %v2539_v51 = vmul.f32 -1.442695, %v793_v50  ;;  %v794_v55 = vadd.f32 %v790_v54, %v3199_v63 }
 0x8bb   :  { %2671 = vpow2.f32 %v2539_v51  ;;  %v2540_v20 = vmul.f32 -1.442695, %v794_v55 }
 0x8bc   :  { %2673 = vtanh.f32 %v794_v55 }
 0x8c8   :  { %v2672_v57 = vpop.eup %2671 }
 0x8c9   :  { %v801_v58 = vadd.f32 1.0, %v2672_v57  ;;  %v2674_v59 = vpop.eup %2673 }
 0x8cb   :  { %2675 = vrcp.f32 %v801_v58 }
 0x8cc   :  { %2677 = vpow2.f32 %v2540_v20 }
 0x8d8   :  { %v2676_v62 = vpop.eup %2675 }
 0x8d9   :  { %v812_v0 = vmul.f32 %v2676_v62, %v2674_v59  ;;  %v811_v2 = vmul.f32 %v2676_v62, %v809_v61  ;;  %v2678_v3 = vpop.eup %2677 }
 0x8da   :  { %v802_v4 = vadd.f32 1.0, %v2678_v3 }
 0x8db   :  { %814 = vrot.lane.b32.xlu1 %v812_v0, %s2972_s2 }
 0x8dc   :  { %2679 = vrcp.f32 %v802_v4 }
 0x8e9   :  { %v2680_v7 = vpop.eup %2679 }
 0x94d   :  { %v815_v5 = vpop.permute.xlu1 %814 }
 0x94e   :  { %v817_v6 = vadd.f32 %v815_v5, %v811_v2 }
 0x950   :  { %2681 = vtanh.f32 %v817_v6  ;;  %v919_v44 = vrot.slane %v817_v6, 7 }
 0x95d   :  { %v2682_v8 = vpop.eup %2681 }
 0x95e   :  { %v3283_v9 = vmul.f32 %v2682_v8, %v2680_v7 }
 0x960   :  { %v821_v10 = vrot.slane %v3283_v9, 3  ;;  %v1265_v11 = vsel %vm1264_vm11, %v1263_v45, %v3283_v9 }
 0x962   :  { %822 = vrot.lane.b32.xlu0 %v821_v10, %s2972_s2 }
 0x9d4   :  { %v823_v12 = vpop.permute.xlu0 %822 }
 0x9d5   :  { %2541 = vmatmul.mubr.msk.f32.vlgmr.msra.gmra.mxu1 %vm198_vm7, %v823_v12 }
 0x9d6   :  { %1063 = vmatpush1.msra.mxu1 %v3093_v21  ;;  %1110 = vmatprep.mubr.f32.mxu1 %v2969_v1 }
 0x9d7   :  { %1064 = vmatprep.subr.mxu1 %v3096_v22 }
 0x9d8   :  { %1065 = vmatpush1.msra.mxu1 %v3099_v23 }
 0x9d9   :  { %1066 = vmatprep.subr.mxu1 %v3102_v24 }
 0x9da   :  { %1067 = vmatpush1.msra.mxu1 %v3105_v25 }
 0x9db   :  { %1068 = vmatprep.subr.mxu1 %v3108_v26 }
 0x9dc   :  { %1069 = vmatpush1.msra.mxu1 %v3111_v27 }
 0x9dd   :  { %1070 = vmatprep.subr.mxu1 %v3114_v28 }
 0x9de   :  { %1071 = vmatpush1.msra.mxu1 %v3117_v29 }
 0x9df   :  { %1072 = vmatprep.subr.mxu1 %v3120_v30 }
 0x9e0   :  { %1073 = vmatpush1.msra.mxu1 %v3123_v31 }
 0x9e1   :  { %1074 = vmatprep.subr.mxu1 %v3126_v32 }
 0x9e2   :  { %1075 = vmatpush1.msra.mxu1 %v3129_v33 }
 0x9e3   :  { %1076 = vmatprep.subr.mxu1 %v3132_v34 }
 0x9e4   :  { %1077 = vmatpush1.msra.mxu1 %v3135_v35 }
 0xa95   :  { %v892_v13 = vpop.f32.mrf.mxu1 }
 0xa96   :  { %v899_v14 = vrot.slane %v892_v13, 4 }
 0xa97   :  { %v894_v18 = vpop.f32.mrf.mxu1 }
 0xa98   :  { %v903_v16 = vadd.f32 %v899_v14, %v3195_v56  ;;  %v900_v19 = vrot.slane %v894_v18, 4 }
 0xa9a   :  { %v2542_v17 = vmul.f32 -1.442695, %v903_v16  ;;  %v904_v39 = vadd.f32 %v900_v19, %v3199_v63 }
 0xa9c   :  { %2683 = vpow2.f32 %v2542_v17  ;;  %v2543_v49 = vmul.f32 -1.442695, %v904_v39 }
 0xa9d   :  { %2685 = vtanh.f32 %v904_v39 }
 0xaa9   :  { %v2684_v40 = vpop.eup %2683 }
 0xaaa   :  { %v911_v41 = vadd.f32 1.0, %v2684_v40  ;;  %v2686_v43 = vpop.eup %2685 }
 0xaac   :  { %2687 = vrcp.f32 %v911_v41 }
 0xaad   :  { %2689 = vpow2.f32 %v2543_v49 }
 0xab9   :  { %v2688_v45 = vpop.eup %2687 }
 0xaba   :  { %v922_v46 = vmul.f32 %v2688_v45, %v2686_v43  ;;  %v921_v48 = vmul.f32 %v2688_v45, %v919_v44  ;;  %v2690_v50 = vpop.eup %2689 }
 0xabb   :  { %v912_v51 = vadd.f32 1.0, %v2690_v50 }
 0xabc   :  { %924 = vrot.lane.b32.xlu1 %v922_v46, %s2972_s2 }
 0xabd   :  { %2691 = vrcp.f32 %v912_v51 }
 0xaca   :  { %v2692_v55 = vpop.eup %2691 }
 0xb2e   :  { %v925_v52 = vpop.permute.xlu1 %924 }
 0xb2f   :  { %v927_v54 = vadd.f32 %v925_v52, %v921_v48 }
 0xb31   :  { %2693 = vtanh.f32 %v927_v54 }
 0xb3e   :  { %v2694_v57 = vpop.eup %2693 }
 0xb3f   :  { %v3309_v58 = vmul.f32 %v2694_v57, %v2692_v55 }
 0xb41   :  { %v931_v59 = vrot.slane %v3309_v58, 4  ;;  %v1266_v61 = vsel %vm116_vm0, %v1265_v11, %v3309_v58 }
 0xb43   :  { %932 = vrot.lane.b32.xlu0 %v931_v59, %s2972_s2 }
 0xbb5   :  { %v933_v62 = vpop.permute.xlu0 %932 }
 0xbb6   :  { %2544 = vmatmul.mubr.msk.f32.vlgmr.msra.gmra.mxu0 %vm198_vm7, %v933_v62 }
 0xbb7   :  { %1173 = vmatpush1.msra.mxu0 %v3093_v21  ;;  %1220 = vmatprep.mubr.f32.mxu0 %v2969_v1 }
 0xbb8   :  { %1174 = vmatprep.subr.mxu0 %v3096_v22 }
 0xbb9   :  { %1175 = vmatpush1.msra.mxu0 %v3099_v23 }
 0xbba   :  { %1176 = vmatprep.subr.mxu0 %v3102_v24 }
 0xbbb   :  { %1177 = vmatpush1.msra.mxu0 %v3105_v25 }
 0xbbc   :  { %1178 = vmatprep.subr.mxu0 %v3108_v26 }
 0xbbd   :  { %1179 = vmatpush1.msra.mxu0 %v3111_v27 }
 0xbbe   :  { %1180 = vmatprep.subr.mxu0 %v3114_v28 }
 0xbbf   :  { %1181 = vmatpush1.msra.mxu0 %v3117_v29 }
 0xbc0   :  { %1182 = vmatprep.subr.mxu0 %v3120_v30 }
 0xbc1   :  { %1183 = vmatpush1.msra.mxu0 %v3123_v31  ;;  %v1029_v31 = vrot.slane %v927_v54, 7 }
 0xbc2   :  { %1184 = vmatprep.subr.mxu0 %v3126_v32 }
 0xbc3   :  { %1185 = vmatpush1.msra.mxu0 %v3129_v33 }
 0xbc4   :  { %1186 = vmatprep.subr.mxu0 %v3132_v34 }
 0xbc5   :  { %1187 = vmatpush1.msra.mxu0 %v3135_v35 }
 0xc76   :  { %v1002_v21 = vpop.f32.mrf.mxu0 }
 0xc77   :  { %v1009_v22 = vrot.slane %v1002_v21, 3 }
 0xc78   :  { %v1004_v25 = vpop.f32.mrf.mxu0 }
 0xc79   :  { %v1013_v23 = vadd.f32 %v1009_v22, %v3195_v56  ;;  %v1010_v26 = vrot.slane %v1004_v25, 3 }
 0xc7b   :  { %v2545_v24 = vmul.f32 -1.442695, %v1013_v23  ;;  %v1014_v27 = vadd.f32 %v1010_v26, %v3199_v63 }
 0xc7d   :  { %2695 = vpow2.f32 %v2545_v24  ;;  %v2546_v35 = vmul.f32 -1.442695, %v1014_v27 }
 0xc7e   :  { %2697 = vtanh.f32 %v1014_v27 }
 0xc8a   :  { %v2696_v28 = vpop.eup %2695 }
 0xc8b   :  { %v1021_v29 = vadd.f32 1.0, %v2696_v28  ;;  %v2698_v30 = vpop.eup %2697 }
 0xc8d   :  { %2699 = vrcp.f32 %v1021_v29 }
 0xc8e   :  { %2701 = vpow2.f32 %v2546_v35  ;;  %v1320_v35 = vld [vmem:[#allocation7 + $0x70] sm:$0xff] }
 0xc9a   :  { %v2700_v32 = vpop.eup %2699 }
 0xc9b   :  { %v1032_v33 = vmul.f32 %v2700_v32, %v2698_v30  ;;  %v1031_v34 = vmul.f32 %v2700_v32, %v1029_v31  ;;  %v2702_v0 = vpop.eup %2701 }
 0xc9c   :  { %v1022_v2 = vadd.f32 1.0, %v2702_v0  ;;  %v1318_v0 = vld [vmem:[#allocation7 + $0x60] sm:$0xff] }
 0xc9d   :  { %1034 = vrot.lane.b32.xlu1 %v1032_v33, %s2972_s2 }
 0xc9e   :  { %2703 = vrcp.f32 %v1022_v2  ;;  %v1317_v2 = vld [vmem:[#allocation7 + $0x58] sm:$0xff] }
 0xcab   :  { %v2704_v4 = vpop.eup %2703 }
 0xd0f   :  { %v1035_v20 = vpop.permute.xlu1 %1034 }
 0xd10   :  { %v1037_v3 = vadd.f32 %v1035_v20, %v1031_v34  ;;  %v1321_v34 = vld [vmem:[#allocation7 + $0x78] sm:$0xff]  ;;  %v1315_v20 = vld [vmem:[#allocation7 + $0x48] sm:$0xff] }
 0xd11   :  { %1369 = vmatprep.subr.mxu1 %v1321_v34  ;;  %v3424_v34 = vld [vmem:[#allocation8] sm:$0xff] }
 0xd12   :  { %2705 = vtanh.f32 %v1037_v3  ;;  %v1139_v41 = vrot.slane %v1037_v3, 7 }
 0xd1f   :  { %v2706_v5 = vpop.eup %2705 }
 0xd20   :  { %v3335_v6 = vmul.f32 %v2706_v5, %v2704_v4 }
 0xd22   :  { %v1041_v7 = vrot.slane %v3335_v6, 5  ;;  %v1268_v8 = vsel %vm1267_vm12, %v1266_v61, %v3335_v6 }
 0xd24   :  { %1042 = vrot.lane.b32.xlu0 %v1041_v7, %s2972_s2 }
 0xd96   :  { %v1043_v10 = vpop.permute.xlu0 %1042 }
 0xd97   :  { %2547 = vmatmul.mubr.msk.f32.vlgmr.msra.gmra.mxu1 %vm198_vm7, %v1043_v10  ;;  %v1314_v10 = vld [vmem:[#allocation7 + $0x40] sm:$0xff] }
 0xd98   :  { %1417 = vmatprep.mubr.f32.mxu1 %v2969_v1  ;;  %1370 = vmatpush1.msra.mxu1 %v1320_v35  ;;  %v1338_v35 = vld [vmem:[#allocation10] sm:$0x3] }
 0xe57   :  { %v1112_v11 = vpop.f32.mrf.mxu1 }
 0xe58   :  { %v1119_v12 = vrot.slane %v1112_v11, 2  ;;  %v1313_v11 = vld [vmem:[#allocation7 + $0x38] sm:$0xff] }
 0xe59   :  { %v1114_v16 = vpop.f32.mrf.mxu1 }
 0xe5a   :  { %v1123_v13 = vadd.f32 %v1119_v12, %v3195_v56  ;;  %v1120_v17 = vrot.slane %v1114_v16, 2  ;;  %v1312_v12 = vld [vmem:[#allocation7 + $0x30] sm:$0xff]  ;;  %v1309_v16 = vld [vmem:[#allocation7 + $0x18] sm:$0xff] }
 0xe5c   :  { %v2548_v14 = vmul.f32 -1.442695, %v1123_v13  ;;  %v1124_v18 = vadd.f32 %v1120_v17, %v3199_v63  ;;  %v1311_v13 = vld [vmem:[#allocation7 + $0x28] sm:$0xff]  ;;  %v1308_v17 = vld [vmem:[#allocation7 + $0x10] sm:$0xff] }
 0xe5e   :  { %2707 = vpow2.f32 %v2548_v14  ;;  %v2549_v46 = vmul.f32 -1.442695, %v1124_v18  ;;  %v1310_v14 = vld [vmem:[#allocation7 + $0x20] sm:$0xff] }
 0xe5f   :  { %2709 = vtanh.f32 %v1124_v18  ;;  %v1307_v18 = vld [vmem:[#allocation7 + $0x8] sm:$0xff] }
 0xe6b   :  { %v2708_v19 = vpop.eup %2707 }
 0xe6c   :  { %v1131_v39 = vadd.f32 1.0, %v2708_v19  ;;  %v2710_v40 = vpop.eup %2709 }
 0xe6e   :  { %2711 = vrcp.f32 %v1131_v39  ;;  %v1306_v39 = vld [vmem:[#allocation7] sm:$0xff] }
 0xe6f   :  { %2713 = vpow2.f32 %v2549_v46  ;;  %v1278_v46 = vrot.slane %v3335_v6, 3  ;;  %v1288_v6 = vrot.slane %v3203_v15, 1  ;;  %v3385_v15 = vld [vmem:[#allocation8 + $0x68] sm:$0xff] }
 0xe7b   :  { %v2712_v43 = vpop.eup %2711 }
 0xe7c   :  { %v1142_v44 = vmul.f32 %v2712_v43, %v2710_v40  ;;  %v1141_v45 = vmul.f32 %v2712_v43, %v1139_v41  ;;  %v2714_v48 = vpop.eup %2713 }
 0xe7d   :  { %v1132_v49 = vadd.f32 1.0, %v2714_v48  ;;  %v1280_v48 = vrot.slane %v3309_v58, 1 }
 0xe7e   :  { %1144 = vrot.lane.b32.xlu1 %v1142_v44, %s2972_s2 }
 0xe7f   :  { %2715 = vrcp.f32 %v1132_v49 }
 0xe8c   :  { %v2716_v52 = vpop.eup %2715 }
 0xef0   :  { %v1145_v50 = vpop.permute.xlu1 %1144 }
 0xef1   :  { %v1147_v51 = vadd.f32 %v1145_v50, %v1141_v45  ;;  %v1282_v50 = vrot.slane %v3283_v9, 7 }
 0xef3   :  { %2717 = vtanh.f32 %v1147_v51  ;;  %v1249_v30 = vrot.slane %v1147_v51, 7 }
 0xf00   :  { %v2718_v54 = vpop.eup %2717 }
 0xf01   :  { %v3346_v55 = vmul.f32 %v2718_v54, %v2716_v52  ;;  %v1284_v52 = vrot.slane %v3253_v42, 5 }
 0xf03   :  { %v1151_v57 = vrot.slane %v3346_v55, 6  ;;  %v3351_v59 = vsel %vm1269_vm13, %v1268_v8, %v3346_v55  ;;  %v1276_v43 = vrot.slane %v3346_v55, 5  ;;  %v1286_v55 = vrot.slane %v3228_v60, 3  ;;  %v3380_v60 = vld [vmem:[#allocation8 + $0x78] sm:$0xff] }
 0xf05   :  { %1152 = vrot.lane.b32.xlu0 %v1151_v57, %s2972_s2 }
 0xf77   :  { %v1153_v61 = vpop.permute.xlu0 %1152 }
 0xf78   :  { %2550 = vmatmul.mubr.msk.f32.vlgmr.msra.gmra.mxu0 %vm198_vm7, %v1153_v61 }
 0xf79   :  { %1488 = vmatprep.mubr.f32.mxu0 %v2969_v1 }
0x1038   :  { %v1222_v62 = vpop.f32.mrf.mxu0 }
0x1039   :  { %v1229_v21 = vrot.slane %v1222_v62, 1 }
0x103a   :  { %v1224_v24 = vpop.f32.mrf.mxu0 }
0x103b   :  { %v1233_v22 = vadd.f32 %v1229_v21, %v3195_v56  ;;  %v1230_v25 = vrot.slane %v1224_v24, 1  ;;  %v1319_v56 = vld [vmem:[#allocation7 + $0x68] sm:$0xff]  ;;  %v3382_v21 = vld [vmem:[#allocation8 + $0x70] sm:$0xff] }
0x103c   :  { %1371 = vmatprep.subr.mxu1 %v1319_v56  ;;  %v3394_v24 = vld [vmem:[#allocation8 + $0x50] sm:$0xff]  ;;  %v1347_v56 = vrot.slane %v1338_v35, %v234_v37 }
0x103d   :  { %v2551_v23 = vmul.f32 -1.442695, %v1233_v22  ;;  %v1234_v26 = vadd.f32 %v1230_v25, %v3199_v63  ;;  %v1316_v63 = vld [vmem:[#allocation7 + $0x50] sm:$0xff]  ;;  %1372 = vmatpush1.msra.mxu1 %v1318_v0  ;;  %v3388_v22 = vld [vmem:[#allocation8 + $0x60] sm:$0xff]  ;;  %v3397_v25 = vld [vmem:[#allocation8 + $0x48] sm:$0xff]  ;;  %v1343_v0 = vrot.slane %v1338_v35, %v230_v38 }
0x103e   :  { %1373 = vmatprep.subr.mxu1 %v1317_v2 }
0x103f   :  { %2719 = vpow2.f32 %v2551_v23  ;;  %1374 = vmatpush1.msra.mxu1 %v1316_v63  ;;  %v2552_v3 = vmul.f32 -1.442695, %v1234_v26  ;;  %v3391_v23 = vld [vmem:[#allocation8 + $0x58] sm:$0xff] }
0x1040   :  { %2721 = vtanh.f32 %v1234_v26  ;;  %1375 = vmatprep.subr.mxu1 %v1315_v20  ;;  %v3400_v26 = vld [vmem:[#allocation8 + $0x40] sm:$0xff] }
0x1041   :  { %1376 = vmatpush1.msra.mxu1 %v1314_v10 }
0x1042   :  { %1377 = vmatprep.subr.mxu1 %v1313_v11 }
0x1043   :  { %1378 = vmatpush1.msra.mxu1 %v1312_v12 }
0x1044   :  { %1379 = vmatprep.subr.mxu1 %v1311_v13 }
0x1045   :  { %1380 = vmatpush1.msra.mxu1 %v1310_v14 }
0x1046   :  { %1381 = vmatprep.subr.mxu1 %v1309_v16 }
0x1047   :  { %1382 = vmatpush1.msra.mxu1 %v1308_v17 }
0x1048   :  { %1383 = vmatprep.subr.mxu1 %v1307_v18 }
0x1049   :  { %1384 = vmatpush1.msra.mxu1 %v1306_v39 }
0x104a   :  { %1617 = vmatprep.subr.mxu1 %v3380_v60 }
0x104c   :  { %v2720_v27 = vpop.eup %2719 }
0x104d   :  { %v1241_v28 = vadd.f32 1.0, %v2720_v27  ;;  %v2722_v29 = vpop.eup %2721  ;;  %v3403_v27 = vld [vmem:[#allocation8 + $0x38] sm:$0xff] }
0x104f   :  { %2723 = vrcp.f32 %v1241_v28  ;;  %v3406_v28 = vld [vmem:[#allocation8 + $0x30] sm:$0xff] }
0x1050   :  { %2725 = vpow2.f32 %v2552_v3 }
0x105c   :  { %v2724_v31 = vpop.eup %2723 }
0x105d   :  { %v1252_v32 = vmul.f32 %v2724_v31, %v2722_v29  ;;  %v1251_v33 = vmul.f32 %v2724_v31, %v1249_v30  ;;  %v2726_v4 = vpop.eup %2725  ;;  %v3409_v29 = vld [vmem:[#allocation8 + $0x28] sm:$0xff]  ;;  %v3412_v30 = vld [vmem:[#allocation8 + $0x20] sm:$0xff]  ;;  %v3415_v31 = vld [vmem:[#allocation8 + $0x18] sm:$0xff] }
0x105e   :  { %v1242_v5 = vadd.f32 1.0, %v2726_v4 }
0x105f   :  { %1254 = vrot.lane.b32.xlu1 %v1252_v32, %s2972_s2  ;;  %v3418_v32 = vld [vmem:[#allocation8 + $0x10] sm:$0xff] }
0x1060   :  { %2727 = vrcp.f32 %v1242_v5 }
0x106d   :  { %v2728_v19 = vpop.eup %2727 }
0x10d1   :  { %v1255_v7 = vpop.permute.xlu1 %1254 }
0x10d2   :  { %v1257_v8 = vadd.f32 %v1255_v7, %v1251_v33  ;;  %v3421_v33 = vld [vmem:[#allocation8 + $0x8] sm:$0xff] }
0x10d4   :  { %2729 = vtanh.f32 %v1257_v8 }
0x10e1   :  { %v2730_v40 = vpop.eup %2729 }
0x10e2   :  { %v1259_v41 = vmul.f32 %v2730_v40, %v2728_v19 }
0x10e4   :  { %v1272_v44 = vsel %vm1271_vm14, %v3351_v59, %v1259_v41  ;;  %v1274_v45 = vrot.slane %v1259_v41, 7 }
0x10e5   :  { %1298 = vrot.lane.b32.xlu0 %v1272_v44, %s2972_s2 }
0x10e6   :  { %v1290_v49 = vsel %vm1260_vm9, %v1274_v45, %v1276_v43 }
0x10e7   :  { %v1291_v51 = vsel %vm1262_vm10, %v1290_v49, %v1278_v46 }
0x10e8   :  { %v1292_v54 = vsel %vm1264_vm11, %v1291_v51, %v1280_v48 }
0x10e9   :  { %v1293_v57 = vsel %vm116_vm0, %v1292_v54, %v1282_v50 }
0x10ea   :  { %v1294_v59 = vsel %vm1267_vm12, %v1293_v57, %v1284_v52 }
0x10eb   :  { %v1295_v58 = vsel %vm1269_vm13, %v1294_v59, %v1286_v55 }
0x10ec   :  { %v1296_v61 = vsel %vm1271_vm14, %v1295_v58, %v1288_v6 }
0x10ed   :  { %1302 = vrot.lane.b32.xlu1 %v1296_v61, %s2972_s2 }
0x1157   :  { %v1299_v9 = vpop.permute.xlu0 %1298 }
0x115f   :  { %v1303_v62 = vpop.permute.xlu1 %1302 }
0x1160   :  { %v1305_v42 = vsel %vm196_vm4, %v1299_v9, %v1303_v62 }
0x1161   :  { %2553 = vmatmul.mubr.msk.f32.vlgmr.msra.gmra.mxu1 %vm198_vm7, %v1305_v42 }
0x1162   :  { %1665 = vmatprep.mubr.f32.mxu1 %v2969_v1  ;;  %1618 = vmatpush1.msra.mxu1 %v3382_v21 }
0x1163   :  { %1619 = vmatprep.subr.mxu1 %v3385_v15 }
0x1164   :  { %1620 = vmatpush1.msra.mxu1 %v3388_v22 }
0x1165   :  { %1621 = vmatprep.subr.mxu1 %v3391_v23 }
0x1166   :  { %1622 = vmatpush1.msra.mxu1 %v3394_v24 }
0x1167   :  { %1623 = vmatprep.subr.mxu1 %v3397_v25 }
0x1168   :  { %1624 = vmatpush1.msra.mxu1 %v3400_v26 }
0x1169   :  { %1625 = vmatprep.subr.mxu1 %v3403_v27 }
0x116a   :  { %1626 = vmatpush1.msra.mxu1 %v3406_v28 }
0x116b   :  { %1627 = vmatprep.subr.mxu1 %v3409_v29 }
0x116c   :  { %1628 = vmatpush1.msra.mxu1 %v3412_v30 }
0x116d   :  { %1629 = vmatprep.subr.mxu1 %v3415_v31 }
0x116e   :  { %1630 = vmatpush1.msra.mxu1 %v3418_v32 }
0x116f   :  { %1631 = vmatprep.subr.mxu1 %v3421_v33 }
0x1170   :  { %1632 = vmatpush1.msra.mxu1 %v3424_v34 }
0x1171   :  { %1837 = vmatprep.subr.mxu1 %v3380_v60 }
0x1221   :  { %v1419_v2 = vpop.f32.mrf.mxu1 }
0x1222   :  { %v1420_v3 = vadd.f32 %v1419_v2, %v1343_v0 }
0x1223   :  { %v1421_v63 = vpop.f32.mrf.mxu1 }
0x1224   :  { %v1422_v20 = vadd.f32 %v1421_v63, %v1347_v56 }
0x1226   :  { %1454 = vmatprep.subr.mxu0 %v1422_v20 }
0x1227   :  { %1455 = vmatpush1.msra.mxu0 %v1420_v3 }
0x1228   :  { %2554 = vmatmul.mubr.msk.f32.vlgmr.msra.gmra.mxu0 %vm312_vm6, %v3150_v47  ;;  %1517 = vmatprep.subr.mxu0 %v3380_v60 }
0x1229   :  { %1518 = vmatpush1.msra.mxu0 %v3382_v21  ;;  %1565 = vmatprep.mubr.f32.mxu0 %v2969_v1 }
0x122a   :  { %1519 = vmatprep.subr.mxu0 %v3385_v15 }
0x122b   :  { %1520 = vmatpush1.msra.mxu0 %v3388_v22 }
0x122c   :  { %1521 = vmatprep.subr.mxu0 %v3391_v23 }
0x122d   :  { %1522 = vmatpush1.msra.mxu0 %v3394_v24 }
0x122e   :  { %1523 = vmatprep.subr.mxu0 %v3397_v25 }
0x122f   :  { %1524 = vmatpush1.msra.mxu0 %v3400_v26 }
0x1230   :  { %1525 = vmatprep.subr.mxu0 %v3403_v27 }
0x1231   :  { %1526 = vmatpush1.msra.mxu0 %v3406_v28 }
0x1232   :  { %1527 = vmatprep.subr.mxu0 %v3409_v29 }
0x1233   :  { %1528 = vmatpush1.msra.mxu0 %v3412_v30 }
0x1234   :  { %1529 = vmatprep.subr.mxu0 %v3415_v31 }
0x1235   :  { %1530 = vmatpush1.msra.mxu0 %v3418_v32 }
0x1236   :  { %1531 = vmatprep.subr.mxu0 %v3421_v33 }
0x1237   :  { %1532 = vmatpush1.msra.mxu0 %v3424_v34 }
0x1238   :  { %1566 = vmatmul.mubr.f32.vlgmr.msra.gmra.mxu0 %v2969_v1  ;;  %1727 = vmatprep.subr.mxu0 %v3380_v60 }
0x1239   :  { %1728 = vmatpush1.msra.mxu0 %v3382_v21  ;;  %1775 = vmatprep.mubr.f32.mxu0 %v2969_v1 }
0x123a   :  { %1729 = vmatprep.subr.mxu0 %v3385_v15 }
0x123b   :  { %1730 = vmatpush1.msra.mxu0 %v3388_v22 }
0x123c   :  { %1731 = vmatprep.subr.mxu0 %v3391_v23 }
0x123d   :  { %1732 = vmatpush1.msra.mxu0 %v3394_v24 }
0x123e   :  { %1733 = vmatprep.subr.mxu0 %v3397_v25 }
0x123f   :  { %1734 = vmatpush1.msra.mxu0 %v3400_v26 }
0x1240   :  { %1735 = vmatprep.subr.mxu0 %v3403_v27 }
0x1241   :  { %1736 = vmatpush1.msra.mxu0 %v3406_v28 }
0x1242   :  { %1737 = vmatprep.subr.mxu0 %v3409_v29 }
0x1243   :  { %1738 = vmatpush1.msra.mxu0 %v3412_v30 }
0x1244   :  { %1739 = vmatprep.subr.mxu0 %v3415_v31 }
0x1245   :  { %1740 = vmatpush1.msra.mxu0 %v3418_v32 }
0x1246   :  { %1741 = vmatprep.subr.mxu0 %v3421_v33 }
0x1247   :  { %1742 = vmatpush1.msra.mxu0 %v3424_v34 }
0x1248   :  { %1947 = vmatprep.subr.mxu0 %v3380_v60 }
0x12e8   :  { %v1490_v36 = vpop.f32.mrf.mxu0 }
0x12e9   :  { %v1495_v37 = vsub.f32 %v1490_v36, %v1420_v3 }
0x12ea   :  { %v1492_v47 = vpop.f32.mrf.mxu0 }
0x12eb   :  { %v1497_v38 = vmul.f32 %v1495_v37, %v3192_v53  ;;  %v1496_v10 = vsub.f32 %v1492_v47, %v1422_v20 }
0x12ed   :  { %v3472_v4 = vadd.f32 %v1497_v38, %v1420_v3  ;;  %v1498_v11 = vmul.f32 %v1496_v10, %v3192_v53 }
0x12ef   :  { %v3476_v13 = vadd.f32 %v1498_v11, %v1422_v20 }
0x12f8   :  { %v1567_v5 = vpop.f32.mrf.mxu0 }
0x12f9   :  { %v1572_v7 = vadd.f32 %v1567_v5, %v3472_v4 }
0x12fa   :  { %v1569_v12 = vpop.f32.mrf.mxu0 }
0x12fb   :  { %v2555_v8 = vmul.f32 -1.442695, %v1572_v7  ;;  %v1573_v14 = vadd.f32 %v1569_v12, %v3476_v13 }
0x12fd   :  { %2731 = vpow2.f32 %v2555_v8  ;;  %v2556_v40 = vmul.f32 -1.442695, %v1573_v14 }
0x12fe   :  { %2733 = vtanh.f32 %v1573_v14 }
0x130a   :  { %v2732_v16 = vpop.eup %2731 }
0x130b   :  { %v1580_v17 = vadd.f32 1.0, %v2732_v16  ;;  %v2734_v18 = vpop.eup %2733 }
0x130d   :  { %2735 = vrcp.f32 %v1580_v17 }
0x130e   :  { %2737 = vpow2.f32 %v2556_v40 }
0x131a   :  { %v2736_v19 = vpop.eup %2735 }
0x131b   :  { %v1588_v39 = vmul.f32 %v2736_v19, %v2734_v18  ;;  %v2738_v41 = vpop.eup %2737  ;;  %v1587_v44 = vmul.f32 0.0, %v2736_v19 }
0x131c   :  { %v1581_v43 = vadd.f32 1.0, %v2738_v41 }
0x131d   :  { %1590 = vrot.lane.b32.xlu0 %v1588_v39, %s2972_s2 }
0x131e   :  { %2739 = vrcp.f32 %v1581_v43 }
0x132b   :  { %v2740_v46 = vpop.eup %2739 }
0x138f   :  { %v1591_v53 = vpop.permute.xlu0 %1590 }
0x1390   :  { %v1593_v45 = vadd.f32 %v1591_v53, %v1587_v44 }
0x1392   :  { %2741 = vtanh.f32 %v1593_v45  ;;  %v1694_v62 = vrot.slane %v1593_v45, 7 }
0x139f   :  { %v2742_v48 = vpop.eup %2741 }
0x13a0   :  { %v3480_v49 = vmul.f32 %v2742_v48, %v2740_v46 }
0x13a2   :  { %1597 = vrot.lane.b32.xlu1 %v3480_v49, %s2972_s2 }
0x1414   :  { %v1598_v50 = vpop.permute.xlu1 %1597 }
0x1415   :  { %2557 = vmatmul.mubr.msk.f32.vlgmr.msra.gmra.mxu1 %vm198_vm7, %v1598_v50 }
0x1416   :  { %1838 = vmatpush1.msra.mxu1 %v3382_v21  ;;  %1885 = vmatprep.mubr.f32.mxu1 %v2969_v1 }
0x1417   :  { %1839 = vmatprep.subr.mxu1 %v3385_v15 }
0x1418   :  { %1840 = vmatpush1.msra.mxu1 %v3388_v22 }
0x1419   :  { %1841 = vmatprep.subr.mxu1 %v3391_v23 }
0x141a   :  { %1842 = vmatpush1.msra.mxu1 %v3394_v24 }
0x141b   :  { %1843 = vmatprep.subr.mxu1 %v3397_v25 }
0x141c   :  { %1844 = vmatpush1.msra.mxu1 %v3400_v26 }
0x141d   :  { %1845 = vmatprep.subr.mxu1 %v3403_v27 }
0x141e   :  { %1846 = vmatpush1.msra.mxu1 %v3406_v28 }
0x141f   :  { %1847 = vmatprep.subr.mxu1 %v3409_v29 }
0x1420   :  { %1848 = vmatpush1.msra.mxu1 %v3412_v30 }
0x1421   :  { %1849 = vmatprep.subr.mxu1 %v3415_v31 }
0x1422   :  { %1850 = vmatpush1.msra.mxu1 %v3418_v32 }
0x1423   :  { %1851 = vmatprep.subr.mxu1 %v3421_v33 }
0x1424   :  { %1852 = vmatpush1.msra.mxu1 %v3424_v34 }
0x1425   :  { %2057 = vmatprep.subr.mxu1 %v3380_v60 }
0x14d5   :  { %v1667_v51 = vpop.f32.mrf.mxu1 }
0x14d6   :  { %v1674_v52 = vrot.slane %v1667_v51, 7 }
0x14d7   :  { %v1669_v57 = vpop.f32.mrf.mxu1 }
0x14d8   :  { %v1678_v54 = vadd.f32 %v1674_v52, %v3472_v4  ;;  %v1675_v6 = vrot.slane %v1669_v57, 7 }
0x14da   :  { %v2558_v55 = vmul.f32 -1.442695, %v1678_v54  ;;  %v1679_v59 = vadd.f32 %v1675_v6, %v3476_v13 }
0x14dc   :  { %2743 = vpow2.f32 %v2558_v55  ;;  %v2559_v0 = vmul.f32 -1.442695, %v1679_v59 }
0x14dd   :  { %2745 = vtanh.f32 %v1679_v59 }
0x14e9   :  { %v2744_v58 = vpop.eup %2743 }
0x14ea   :  { %v1686_v61 = vadd.f32 1.0, %v2744_v58  ;;  %v2746_v9 = vpop.eup %2745 }
0x14ec   :  { %2747 = vrcp.f32 %v1686_v61 }
0x14ed   :  { %2749 = vpow2.f32 %v2559_v0 }
0x14f9   :  { %v2748_v42 = vpop.eup %2747 }
0x14fa   :  { %v1697_v35 = vmul.f32 %v2748_v42, %v2746_v9  ;;  %v1696_v56 = vmul.f32 %v2748_v42, %v1694_v62  ;;  %v2750_v2 = vpop.eup %2749 }
0x14fb   :  { %v1687_v63 = vadd.f32 1.0, %v2750_v2 }
0x14fc   :  { %1699 = vrot.lane.b32.xlu0 %v1697_v35, %s2972_s2 }
0x14fd   :  { %2751 = vrcp.f32 %v1687_v63 }
0x150a   :  { %v2752_v36 = vpop.eup %2751 }
0x156e   :  { %v1700_v20 = vpop.permute.xlu0 %1699 }
0x156f   :  { %v1702_v3 = vadd.f32 %v1700_v20, %v1696_v56 }
0x1571   :  { %2753 = vtanh.f32 %v1702_v3  ;;  %v1804_v39 = vrot.slane %v1702_v3, 7 }
0x157e   :  { %v2754_v37 = vpop.eup %2753 }
0x157f   :  { %v3505_v38 = vmul.f32 %v2754_v37, %v2752_v36 }
0x1581   :  { %v1706_v47 = vrot.slane %v3505_v38, 1  ;;  %v2365_v54 = vsel %vm1260_vm9, %v3480_v49, %v3505_v38 }
0x1583   :  { %1707 = vrot.lane.b32.xlu1 %v1706_v47, %s2972_s2 }
0x15f5   :  { %v1708_v5 = vpop.permute.xlu1 %1707 }
0x15f6   :  { %2560 = vmatmul.mubr.msk.f32.vlgmr.msra.gmra.mxu0 %vm198_vm7, %v1708_v5 }
0x15f7   :  { %1948 = vmatpush1.msra.mxu0 %v3382_v21  ;;  %1995 = vmatprep.mubr.f32.mxu0 %v2969_v1 }
0x15f8   :  { %1949 = vmatprep.subr.mxu0 %v3385_v15 }
0x15f9   :  { %1950 = vmatpush1.msra.mxu0 %v3388_v22 }
0x15fa   :  { %1951 = vmatprep.subr.mxu0 %v3391_v23 }
0x15fb   :  { %1952 = vmatpush1.msra.mxu0 %v3394_v24 }
0x15fc   :  { %1953 = vmatprep.subr.mxu0 %v3397_v25 }
0x15fd   :  { %1954 = vmatpush1.msra.mxu0 %v3400_v26 }
0x15fe   :  { %1955 = vmatprep.subr.mxu0 %v3403_v27 }
0x15ff   :  { %1956 = vmatpush1.msra.mxu0 %v3406_v28 }
0x1600   :  { %1957 = vmatprep.subr.mxu0 %v3409_v29 }
0x1601   :  { %1958 = vmatpush1.msra.mxu0 %v3412_v30 }
0x1602   :  { %1959 = vmatprep.subr.mxu0 %v3415_v31 }
0x1603   :  { %1960 = vmatpush1.msra.mxu0 %v3418_v32 }
0x1604   :  { %1961 = vmatprep.subr.mxu0 %v3421_v33 }
0x1605   :  { %1962 = vmatpush1.msra.mxu0 %v3424_v34 }
0x1606   :  { %2167 = vmatprep.subr.mxu0 %v3380_v60 }
0x16b6   :  { %v1777_v7 = vpop.f32.mrf.mxu0 }
0x16b7   :  { %v1784_v8 = vrot.slane %v1777_v7, 6 }
0x16b8   :  { %v1779_v12 = vpop.f32.mrf.mxu0 }
0x16b9   :  { %v1788_v10 = vadd.f32 %v1784_v8, %v3472_v4  ;;  %v1785_v14 = vrot.slane %v1779_v12, 6 }
0x16bb   :  { %v2561_v11 = vmul.f32 -1.442695, %v1788_v10  ;;  %v1789_v16 = vadd.f32 %v1785_v14, %v3476_v13 }
0x16bd   :  { %2755 = vpow2.f32 %v2561_v11  ;;  %v2562_v44 = vmul.f32 -1.442695, %v1789_v16 }
0x16be   :  { %2757 = vtanh.f32 %v1789_v16 }
0x16ca   :  { %v2756_v17 = vpop.eup %2755 }
0x16cb   :  { %v1796_v18 = vadd.f32 1.0, %v2756_v17  ;;  %v2758_v19 = vpop.eup %2757 }
0x16cd   :  { %2759 = vrcp.f32 %v1796_v18 }
0x16ce   :  { %2761 = vpow2.f32 %v2562_v44 }
0x16da   :  { %v2760_v40 = vpop.eup %2759 }
0x16db   :  { %v1807_v41 = vmul.f32 %v2760_v40, %v2758_v19  ;;  %v1806_v43 = vmul.f32 %v2760_v40, %v1804_v39  ;;  %v2762_v53 = vpop.eup %2761 }
0x16dc   :  { %v1797_v45 = vadd.f32 1.0, %v2762_v53 }
0x16dd   :  { %1809 = vrot.lane.b32.xlu0 %v1807_v41, %s2972_s2 }
0x16de   :  { %2763 = vrcp.f32 %v1797_v45 }
0x16eb   :  { %v2764_v50 = vpop.eup %2763 }
0x174f   :  { %v1810_v46 = vpop.permute.xlu0 %1809 }
0x1750   :  { %v1812_v48 = vadd.f32 %v1810_v46, %v1806_v43 }
0x1752   :  { %2765 = vtanh.f32 %v1812_v48  ;;  %v1914_v63 = vrot.slane %v1812_v48, 7 }
0x175f   :  { %v2766_v51 = vpop.eup %2765 }
0x1760   :  { %v3530_v52 = vmul.f32 %v2766_v51, %v2764_v50 }
0x1762   :  { %v1816_v55 = vrot.slane %v3530_v52, 2  ;;  %v2366_v57 = vsel %vm1262_vm10, %v2365_v54, %v3530_v52 }
0x1764   :  { %1817 = vrot.lane.b32.xlu1 %v1816_v55, %s2972_s2 }
0x17d6   :  { %v1818_v6 = vpop.permute.xlu1 %1817 }
0x17d7   :  { %2563 = vmatmul.mubr.msk.f32.vlgmr.msra.gmra.mxu1 %vm198_vm7, %v1818_v6 }
0x17d8   :  { %2058 = vmatpush1.msra.mxu1 %v3382_v21  ;;  %2105 = vmatprep.mubr.f32.mxu1 %v2969_v1 }
0x17d9   :  { %2059 = vmatprep.subr.mxu1 %v3385_v15 }
0x17da   :  { %2060 = vmatpush1.msra.mxu1 %v3388_v22 }
0x17db   :  { %2061 = vmatprep.subr.mxu1 %v3391_v23 }
0x17dc   :  { %2062 = vmatpush1.msra.mxu1 %v3394_v24 }
0x17dd   :  { %2063 = vmatprep.subr.mxu1 %v3397_v25 }
0x17de   :  { %2064 = vmatpush1.msra.mxu1 %v3400_v26 }
0x17df   :  { %2065 = vmatprep.subr.mxu1 %v3403_v27 }
0x17e0   :  { %2066 = vmatpush1.msra.mxu1 %v3406_v28 }
0x17e1   :  { %2067 = vmatprep.subr.mxu1 %v3409_v29 }
0x17e2   :  { %2068 = vmatpush1.msra.mxu1 %v3412_v30 }
0x17e3   :  { %2069 = vmatprep.subr.mxu1 %v3415_v31 }
0x17e4   :  { %2070 = vmatpush1.msra.mxu1 %v3418_v32 }
0x17e5   :  { %2071 = vmatprep.subr.mxu1 %v3421_v33 }
0x17e6   :  { %2072 = vmatpush1.msra.mxu1 %v3424_v34 }
0x17e7   :  { %2277 = vmatprep.subr.mxu1 %v3380_v60 }
0x1897   :  { %v1887_v59 = vpop.f32.mrf.mxu1 }
0x1898   :  { %v1894_v58 = vrot.slane %v1887_v59, 5 }
0x1899   :  { %v1889_v62 = vpop.f32.mrf.mxu1 }
0x189a   :  { %v1898_v61 = vadd.f32 %v1894_v58, %v3472_v4  ;;  %v1895_v42 = vrot.slane %v1889_v62, 5 }
0x189c   :  { %v2564_v9 = vmul.f32 -1.442695, %v1898_v61  ;;  %v1899_v35 = vadd.f32 %v1895_v42, %v3476_v13 }
0x189e   :  { %2767 = vpow2.f32 %v2564_v9  ;;  %v2565_v60 = vmul.f32 -1.442695, %v1899_v35 }
0x189f   :  { %2769 = vtanh.f32 %v1899_v35 }
0x18ab   :  { %v2768_v56 = vpop.eup %2767 }
0x18ac   :  { %v1906_v0 = vadd.f32 1.0, %v2768_v56  ;;  %v2770_v2 = vpop.eup %2769 }
0x18ae   :  { %2771 = vrcp.f32 %v1906_v0 }
0x18af   :  { %2773 = vpow2.f32 %v2565_v60 }
0x18bb   :  { %v2772_v20 = vpop.eup %2771 }
0x18bc   :  { %v1917_v3 = vmul.f32 %v2772_v20, %v2770_v2  ;;  %v1916_v36 = vmul.f32 %v2772_v20, %v1914_v63  ;;  %v2774_v37 = vpop.eup %2773 }
0x18bd   :  { %v1907_v47 = vadd.f32 1.0, %v2774_v37 }
0x18be   :  { %1919 = vrot.lane.b32.xlu0 %v1917_v3, %s2972_s2 }
0x18bf   :  { %2775 = vrcp.f32 %v1907_v47 }
0x18cc   :  { %v2776_v8 = vpop.eup %2775 }
0x1930   :  { %v1920_v5 = vpop.permute.xlu0 %1919 }
0x1931   :  { %v1922_v7 = vadd.f32 %v1920_v5, %v1916_v36 }
0x1933   :  { %2777 = vtanh.f32 %v1922_v7  ;;  %v2024_v46 = vrot.slane %v1922_v7, 7 }
0x1940   :  { %v2778_v10 = vpop.eup %2777 }
0x1941   :  { %v3560_v11 = vmul.f32 %v2778_v10, %v2776_v8 }
0x1943   :  { %v1926_v12 = vrot.slane %v3560_v11, 3  ;;  %v2367_v14 = vsel %vm1264_vm11, %v2366_v57, %v3560_v11 }
0x1945   :  { %1927 = vrot.lane.b32.xlu1 %v1926_v12, %s2972_s2 }
0x19b7   :  { %v1928_v16 = vpop.permute.xlu1 %1927 }
0x19b8   :  { %2566 = vmatmul.mubr.msk.f32.vlgmr.msra.gmra.mxu0 %vm198_vm7, %v1928_v16 }
0x19b9   :  { %2168 = vmatpush1.msra.mxu0 %v3382_v21  ;;  %2215 = vmatprep.mubr.f32.mxu0 %v2969_v1 }
0x19ba   :  { %2169 = vmatprep.subr.mxu0 %v3385_v15 }
0x19bb   :  { %2170 = vmatpush1.msra.mxu0 %v3388_v22 }
0x19bc   :  { %2171 = vmatprep.subr.mxu0 %v3391_v23 }
0x19bd   :  { %2172 = vmatpush1.msra.mxu0 %v3394_v24 }
0x19be   :  { %2173 = vmatprep.subr.mxu0 %v3397_v25 }
0x19bf   :  { %2174 = vmatpush1.msra.mxu0 %v3400_v26 }
0x19c0   :  { %2175 = vmatprep.subr.mxu0 %v3403_v27 }
0x19c1   :  { %2176 = vmatpush1.msra.mxu0 %v3406_v28 }
0x19c2   :  { %2177 = vmatprep.subr.mxu0 %v3409_v29 }
0x19c3   :  { %2178 = vmatpush1.msra.mxu0 %v3412_v30 }
0x19c4   :  { %2179 = vmatprep.subr.mxu0 %v3415_v31 }
0x19c5   :  { %2180 = vmatpush1.msra.mxu0 %v3418_v32 }
0x19c6   :  { %2181 = vmatprep.subr.mxu0 %v3421_v33 }
0x19c7   :  { %2182 = vmatpush1.msra.mxu0 %v3424_v34 }
0x19c8   :  { %2602 = vmatprep.subr.mxu0 %v2969_v1 }
0x1a78   :  { %v1997_v17 = vpop.f32.mrf.mxu0 }
0x1a79   :  { %v2004_v18 = vrot.slane %v1997_v17, 4 }
0x1a7a   :  { %v1999_v40 = vpop.f32.mrf.mxu0 }
0x1a7b   :  { %v2008_v19 = vadd.f32 %v2004_v18, %v3472_v4  ;;  %v2005_v41 = vrot.slane %v1999_v40, 4 }
0x1a7d   :  { %v2567_v39 = vmul.f32 -1.442695, %v2008_v19  ;;  %v2009_v43 = vadd.f32 %v2005_v41, %v3476_v13 }
0x1a7f   :  { %2779 = vpow2.f32 %v2567_v39  ;;  %v2568_v54 = vmul.f32 -1.442695, %v2009_v43 }
0x1a80   :  { %2781 = vtanh.f32 %v2009_v43 }
0x1a8c   :  { %v2780_v44 = vpop.eup %2779 }
0x1a8d   :  { %v2016_v53 = vadd.f32 1.0, %v2780_v44  ;;  %v2782_v45 = vpop.eup %2781 }
0x1a8f   :  { %2783 = vrcp.f32 %v2016_v53 }
0x1a90   :  { %2785 = vpow2.f32 %v2568_v54 }
0x1a9c   :  { %v2784_v48 = vpop.eup %2783 }
0x1a9d   :  { %v2027_v50 = vmul.f32 %v2784_v48, %v2782_v45  ;;  %v2026_v51 = vmul.f32 %v2784_v48, %v2024_v46  ;;  %v2786_v55 = vpop.eup %2785 }
0x1a9e   :  { %v2017_v57 = vadd.f32 1.0, %v2786_v55 }
0x1a9f   :  { %2029 = vrot.lane.b32.xlu0 %v2027_v50, %s2972_s2 }
0x1aa0   :  { %2787 = vrcp.f32 %v2017_v57 }
0x1aad   :  { %v2788_v58 = vpop.eup %2787 }
0x1b11   :  { %v2030_v6 = vpop.permute.xlu0 %2029 }
0x1b12   :  { %v2032_v59 = vadd.f32 %v2030_v6, %v2026_v51 }
0x1b14   :  { %2789 = vtanh.f32 %v2032_v59 }
0x1b21   :  { %v2790_v61 = vpop.eup %2789 }
0x1b22   :  { %v3587_v9 = vmul.f32 %v2790_v61, %v2788_v58 }
0x1b24   :  { %v2036_v62 = vrot.slane %v3587_v9, 4  ;;  %v2368_v42 = vsel %vm116_vm0, %v2367_v14, %v3587_v9 }
0x1b26   :  { %2037 = vrot.lane.b32.xlu1 %v2036_v62, %s2972_s2 }
0x1b98   :  { %v2038_v35 = vpop.permute.xlu1 %2037 }
0x1b99   :  { %2569 = vmatmul.mubr.msk.f32.vlgmr.msra.gmra.mxu1 %vm198_vm7, %v2038_v35 }
0x1b9a   :  { %2278 = vmatpush1.msra.mxu1 %v3382_v21  ;;  %2325 = vmatprep.mubr.f32.mxu1 %v2969_v1 }
0x1b9b   :  { %2279 = vmatprep.subr.mxu1 %v3385_v15 }
0x1b9c   :  { %2280 = vmatpush1.msra.mxu1 %v3388_v22 }
0x1b9d   :  { %2281 = vmatprep.subr.mxu1 %v3391_v23 }
0x1b9e   :  { %2282 = vmatpush1.msra.mxu1 %v3394_v24 }
0x1b9f   :  { %2283 = vmatprep.subr.mxu1 %v3397_v25 }
0x1ba0   :  { %2284 = vmatpush1.msra.mxu1 %v3400_v26 }
0x1ba1   :  { %2285 = vmatprep.subr.mxu1 %v3403_v27 }
0x1ba2   :  { %2286 = vmatpush1.msra.mxu1 %v3406_v28 }
0x1ba3   :  { %2287 = vmatprep.subr.mxu1 %v3409_v29 }
0x1ba4   :  { %2288 = vmatpush1.msra.mxu1 %v3412_v30  ;;  %v2134_v30 = vrot.slane %v2032_v59, 7 }
0x1ba5   :  { %2289 = vmatprep.subr.mxu1 %v3415_v31 }
0x1ba6   :  { %2290 = vmatpush1.msra.mxu1 %v3418_v32 }
0x1ba7   :  { %2291 = vmatprep.subr.mxu1 %v3421_v33 }
0x1ba8   :  { %2292 = vmatpush1.msra.mxu1 %v3424_v34 }
0x1c59   :  { %v2107_v21 = vpop.f32.mrf.mxu1 }
0x1c5a   :  { %v2114_v15 = vrot.slane %v2107_v21, 3 }
0x1c5b   :  { %v2109_v24 = vpop.f32.mrf.mxu1 }
0x1c5c   :  { %v2118_v22 = vadd.f32 %v2114_v15, %v3472_v4  ;;  %v2115_v25 = vrot.slane %v2109_v24, 3 }
0x1c5e   :  { %v2570_v23 = vmul.f32 -1.442695, %v2118_v22  ;;  %v2119_v26 = vadd.f32 %v2115_v25, %v3476_v13 }
0x1c60   :  { %2791 = vpow2.f32 %v2570_v23  ;;  %v2571_v34 = vmul.f32 -1.442695, %v2119_v26 }
0x1c61   :  { %2793 = vtanh.f32 %v2119_v26 }
0x1c6d   :  { %v2792_v27 = vpop.eup %2791 }
0x1c6e   :  { %v2126_v28 = vadd.f32 1.0, %v2792_v27  ;;  %v2794_v29 = vpop.eup %2793 }
0x1c70   :  { %2795 = vrcp.f32 %v2126_v28  ;;  %v2411_v28 = vld [vmem:[%s3702_s8 + $0x30] sm:$0xff] }
0x1c71   :  { %2797 = vpow2.f32 %v2571_v34  ;;  %v2409_v34 = vld [vmem:[%s3702_s8 + $0x20] sm:$0xff] }
0x1c7d   :  { %v2796_v31 = vpop.eup %2795 }
0x1c7e   :  { %v2137_v32 = vmul.f32 %v2796_v31, %v2794_v29  ;;  %v2136_v33 = vmul.f32 %v2796_v31, %v2134_v30  ;;  %v2798_v56 = vpop.eup %2797 }
0x1c7f   :  { %v2127_v0 = vadd.f32 1.0, %v2798_v56  ;;  %v2408_v56 = vld [vmem:[%s3702_s8 + $0x18] sm:$0xff] }
0x1c80   :  { %2139 = vrot.lane.b32.xlu0 %v2137_v32, %s2972_s2 }
0x1c81   :  { %2799 = vrcp.f32 %v2127_v0  ;;  %v2407_v0 = vld [vmem:[%s3702_s8 + $0x10] sm:$0xff] }
0x1c8e   :  { %v2800_v20 = vpop.eup %2799 }
0x1cf2   :  { %v2140_v2 = vpop.permute.xlu0 %2139 }
0x1cf3   :  { %v2142_v63 = vadd.f32 %v2140_v2, %v2136_v33  ;;  %v2406_v2 = vld [vmem:[%s3702_s8 + $0x8] sm:$0xff] }
0x1cf5   :  { %2801 = vtanh.f32 %v2142_v63  ;;  %v2244_v39 = vrot.slane %v2142_v63, 7 }
0x1d02   :  { %v2802_v3 = vpop.eup %2801 }
0x1d03   :  { %v3613_v36 = vmul.f32 %v2802_v3, %v2800_v20  ;;  %v2405_v20 = vld [vmem:[%s3702_s8] sm:$0xff] }
0x1d05   :  { %v2146_v60 = vrot.slane %v3613_v36, 5  ;;  %v2369_v37 = vsel %vm1267_vm12, %v2368_v42, %v3613_v36 }
0x1d07   :  { %2147 = vrot.lane.b32.xlu1 %v2146_v60, %s2972_s2 }
0x1d79   :  { %v2148_v47 = vpop.permute.xlu1 %2147 }
0x1d7a   :  { %2572 = vmatmul.mubr.msk.f32.vlgmr.msra.gmra.mxu0 %vm198_vm7, %v2148_v47 }
0x1d7b   :  { %2618 = vmatprep.mubr.msk.f32.mxu0 %vm2970_vm1, %v2969_v1 }
0x1e3a   :  { %v2217_v5 = vpop.f32.mrf.mxu0 }
0x1e3b   :  { %v2224_v7 = vrot.slane %v2217_v5, 2 }
0x1e3c   :  { %v2219_v12 = vpop.f32.mrf.mxu0 }
0x1e3d   :  { %v2228_v8 = vadd.f32 %v2224_v7, %v3472_v4  ;;  %v2225_v14 = vrot.slane %v2219_v12, 2  ;;  %v2377_v7 = vrot.slane %v3613_v36, 3  ;;  %v2387_v36 = vrot.slane %v3480_v49, 1 }
0x1e3f   :  { %v2573_v10 = vmul.f32 -1.442695, %v2228_v8  ;;  %v2229_v16 = vadd.f32 %v2225_v14, %v3476_v13  ;;  %v2379_v8 = vrot.slane %v3587_v9, 1  ;;  %v2383_v14 = vrot.slane %v3530_v52, 5 }
0x1e41   :  { %2803 = vpow2.f32 %v2573_v10  ;;  %v2574_v44 = vmul.f32 -1.442695, %v2229_v16  ;;  %v2381_v10 = vrot.slane %v3560_v11, 7 }
0x1e42   :  { %2805 = vtanh.f32 %v2229_v16 }
0x1e4e   :  { %v2804_v17 = vpop.eup %2803 }
0x1e4f   :  { %v2236_v18 = vadd.f32 1.0, %v2804_v17  ;;  %v2806_v19 = vpop.eup %2805  ;;  %v2385_v17 = vrot.slane %v3505_v38, 3  ;;  %v2578_v38 = vld [vmem:[%s3703_s9] ss:$0 sm:$0xff]  ;;  %s2973_s9 = smov [#allocation11]  }
0x1e50   :  { %s2513_s27 = sshll.u32 %s2973_s9, 4  ;;  %s2514_s27 = int_to_ptr.vmem [resolvable:$true] %s2513_s27 }
0x1e51   :  { %2807 = vrcp.f32 %v2236_v18  ;;  %s2933_s28 = scalar_lea.vmem %s2514_s27, 128  ;;  %p2938_p12 = scmp.lt.s32.totalorder %s2514_s27, %s2514_s27 }
0x1e52   :  { %2809 = vpow2.f32 %v2574_v44  ;;  %p2934_p11 = scmp.ne.s32.totalorder %s2514_s27, %s2933_s28  ;;  %p2939_p13 = scmp.lt.s32.totalorder %s2933_s28, %s2933_s28 }
0x1e54   :  { %p2940_p0 = por %p2939_p13, %p2938_p12 }
0x1e56   :  { %p2941_p1 = pnand %p2940_p0, %p2934_p11 }
0x1e5e   :  { %v2808_v40 = vpop.eup %2807 }
0x1e5f   :  { %v2247_v41 = vmul.f32 %v2808_v40, %v2806_v19  ;;  %v2246_v43 = vmul.f32 %v2808_v40, %v2244_v39  ;;  %v2810_v53 = vpop.eup %2809 }
0x1e60   :  { %v2237_v45 = vadd.f32 1.0, %v2810_v53 }
0x1e61   :  { %2249 = vrot.lane.b32.xlu0 %v2247_v41, %s2972_s2 }
0x1e62   :  { %2811 = vrcp.f32 %v2237_v45 }
0x1e6f   :  { %v2812_v50 = vpop.eup %2811 }
0x1ed3   :  { %v2250_v46 = vpop.permute.xlu0 %2249 }
0x1ed4   :  { %v2252_v48 = vadd.f32 %v2250_v46, %v2246_v43 }
0x1ed6   :  { %2813 = vtanh.f32 %v2252_v48  ;;  %v2354_v24 = vrot.slane %v2252_v48, 7 }
0x1ee3   :  { %v2814_v51 = vpop.eup %2813 }
0x1ee4   :  { %v3625_v54 = vmul.f32 %v2814_v51, %v2812_v50 }
0x1ee6   :  { %v2256_v55 = vrot.slane %v3625_v54, 6  ;;  %v2370_v57 = vsel %vm1269_vm13, %v2369_v37, %v3625_v54  ;;  %v2375_v37 = vrot.slane %v3625_v54, 5 }
0x1ee8   :  { %2257 = vrot.lane.b32.xlu1 %v2256_v55, %s2972_s2 }
0x1f5a   :  { %v2258_v6 = vpop.permute.xlu1 %2257 }
0x1f5b   :  { %2575 = vmatmul.mubr.msk.f32.vlgmr.msra.gmra.mxu1 %vm198_vm7, %v2258_v6 }
0x201b   :  { %v2327_v59 = vpop.f32.mrf.mxu1 }
0x201c   :  { %v2334_v58 = vrot.slane %v2327_v59, 1 }
0x201d   :  { %v2329_v42 = vpop.f32.mrf.mxu1 }
0x201e   :  { %v2338_v61 = vadd.f32 %v2334_v58, %v3472_v4  ;;  %v2335_v35 = vrot.slane %v2329_v42, 1  ;;  %v2412_v4 = vld [vmem:[%s3702_s8 + $0x38] sm:$0xff] }
0x201f   :  { %2603 = vmatpush3.msra.mxu0 %v2412_v4 }
0x2020   :  { %v2576_v62 = vmul.f32 -1.442695, %v2338_v61  ;;  %v2339_v21 = vadd.f32 %v2335_v35, %v3476_v13  ;;  %2604 = vmatprep.subr.mxu0 %v2969_v1  ;;  %v2410_v13 = vld [vmem:[%s3702_s8 + $0x28] sm:$0xff] }
0x2021   :  { %2605 = vmatpush3.msra.mxu0 %v2411_v28 }
0x2022   :  { %2815 = vpow2.f32 %v2576_v62  ;;  %2606 = vmatprep.subr.mxu0 %v2969_v1  ;;  %v2577_v29 = vmul.f32 -1.442695, %v2339_v21 }
0x2023   :  { %2817 = vtanh.f32 %v2339_v21  ;;  %2607 = vmatpush3.msra.mxu0 %v2410_v13 }
0x2024   :  { %2608 = vmatprep.subr.mxu0 %v2969_v1 }
0x2025   :  { %2609 = vmatpush3.msra.mxu0 %v2409_v34 }
0x2026   :  { %2610 = vmatprep.subr.mxu0 %v2969_v1 }
0x2027   :  { %2611 = vmatpush3.msra.mxu0 %v2408_v56 }
0x2028   :  { %2612 = vmatprep.subr.mxu0 %v2969_v1 }
0x2029   :  { %2613 = vmatpush3.msra.mxu0 %v2407_v0 }
0x202a   :  { %2614 = vmatprep.subr.mxu0 %v2969_v1 }
0x202b   :  { %2615 = vmatpush3.msra.mxu0 %v2406_v2 }
0x202c   :  { %2616 = vmatprep.subr.mxu0 %v2969_v1 }
0x202d   :  { %2617 = vmatpush3.msra.mxu0 %v2405_v20 }
0x202f   :  { %v2816_v15 = vpop.eup %2815 }
0x2030   :  { %v2346_v22 = vadd.f32 1.0, %v2816_v15  ;;  %v2818_v23 = vpop.eup %2817 }
0x2032   :  { %2819 = vrcp.f32 %v2346_v22 }
0x2033   :  { %2821 = vpow2.f32 %v2577_v29 }
0x203f   :  { %v2820_v25 = vpop.eup %2819 }
0x2040   :  { %v2357_v26 = vmul.f32 %v2820_v25, %v2818_v23  ;;  %v2356_v27 = vmul.f32 %v2820_v25, %v2354_v24  ;;  %v2822_v30 = vpop.eup %2821 }
0x2041   :  { %v2347_v31 = vadd.f32 1.0, %v2822_v30 }
0x2042   :  { %2359 = vrot.lane.b32.xlu0 %v2357_v26, %s2972_s2 }
0x2043   :  { %2823 = vrcp.f32 %v2347_v31 }
0x2050   :  { %v2824_v63 = vpop.eup %2823 }
0x20b4   :  { %v2360_v32 = vpop.permute.xlu0 %2359 }
0x20b5   :  { %v2362_v33 = vadd.f32 %v2360_v32, %v2356_v27 }
0x20b7   :  { %2825 = vtanh.f32 %v2362_v33 }
0x20c4   :  { %v2826_v3 = vpop.eup %2825 }
0x20c5   :  { %v2364_v60 = vmul.f32 %v2826_v3, %v2824_v63 }
0x20c7   :  { %v2371_v47 = vsel %vm1271_vm14, %v2370_v57, %v2364_v60  ;;  %v2373_v5 = vrot.slane %v2364_v60, 7 }
0x20c8   :  { %2397 = vrot.lane.b32.xlu1 %v2371_v47, %s2972_s2 }
0x20c9   :  { %v2389_v1 = vsel %vm1260_vm9, %v2373_v5, %v2375_v37 }
0x20ca   :  { %v2390_v12 = vsel %vm1262_vm10, %v2389_v1, %v2377_v7 }
0x20cb   :  { %v2391_v16 = vsel %vm1264_vm11, %v2390_v12, %v2379_v8 }
0x20cc   :  { %v2392_v18 = vsel %vm116_vm0, %v2391_v16, %v2381_v10 }
0x20cd   :  { %v2393_v19 = vsel %vm1267_vm12, %v2392_v18, %v2383_v14 }
0x20ce   :  { %v2394_v9 = vsel %vm1269_vm13, %v2393_v19, %v2385_v17 }
0x20cf   :  { %v2395_v39 = vsel %vm1271_vm14, %v2394_v9, %v2387_v36 }
0x20d0   :  { %2401 = vrot.lane.b32.xlu0 %v2395_v39, %s2972_s2 }
0x213a   :  { %v2398_v11 = vpop.permute.xlu1 %2397 }
0x2142   :  { %v2402_v40 = vpop.permute.xlu0 %2401 }
0x2143   :  { %v2404_v52 = vsel %vm196_vm4, %v2398_v11, %v2402_v40 }
0x2144   :  { %2619 = vmatmul.mubr.msk.f32.vlgmr.msra.gmra.mxu0 %vm198_vm7, %v2404_v52 }
0x2204   :  { %v2489_v41 = vpop.f32.mrf.mxu0 }
0x2205   :  { %v2490_v49 = vadd.f32 %v2578_v38, %v2489_v41 }
0x2206   :  { %v2620_v43 = vpop.f32.mrf.mxu0 }
0x2207   :  { %2827 = vtanh.f32 %v2490_v49 }
0x2214   :  { %v2828_v44 = vpop.eup %2827 }
0x2215   :  { %v2494_v53 = vsel %vm312_vm6, %v2828_v44, -inf }
0x2216   :  { %2495 = vmax.xlane.f32.xlu1 %v2494_v53 }
0x229f   :  { %v2496_v45 = vpop.xlane.xlu1 %2495 }
0x22a0   :  { %v2497_v46 = vsub.f32 %v2828_v44, %v2496_v45 }
0x22a2   :  { %v2498_v48 = vmul.f32 1.442695, %v2497_v46 }
0x22a4   :  { %2829 = vpow2.f32 %v2498_v48 }
0x22b1   :  { %v2830_v50 = vpop.eup %2829 }
0x22b2   :  { %v2500_v51 = vsel %vm312_vm6, %v2830_v50, 0.0 }
0x22b3   :  { %2501 = vadd.xlane.f32.xlu0 %v2500_v51 }
0x233c   :  { %v2502_v54 = vpop.xlane.xlu0 %2501 }
0x233d   :  { %2831 = vlog2.f32 %v2502_v54 }
0x234a   :  { %v2832_v55 = vpop.eup %2831 }
0x234b   :  { %v2504_v57 = vmul.f32 0.6931472, %v2832_v55 }
0x234d   :  { %v2505_v6 = vsub.f32 %v2497_v46, %v2504_v57 }
0x234f   :  { %2506 = vst.msk [vmem:[#allocation11] sm:$0xff] %vm312_vm6, %v2505_v6 }
0x2350   :  { %2944 = shalt.err (!%p2941_p1)
}
0x2351   :  { %2516 = dma.vmem_to_hbm [thread:$0]  %s2514_s27, 128, %s3704_s10, [#allocation4]  }
0x2352   :  { %2959 = dma.done.wait [#allocation4], 128  }
0x2353   :  { %2960 = vsyncadd [#allocation4], 4294967168 }
0x2354   :  { %2520 = vsyncpa [#allocation3], 1 }
0x2355   :  { %2521 = vsyncpa [#allocation6], 1 }
0x2356   :  { %2522 = vsyncpa [#allocation9], 1 }
0x2357   :  { %2523 = vsyncpa [#allocation4], 1 }

</bundles_post_ra>
